<compile_context>
chip_gen: v7x
topology: tpu7x:2x2x1
jax: 0.10.0
libtpu: 0.0.40
codegen_flags: <defaults>
</compile_context>

<pallas_src>
import jax
import jax.numpy as jnp
from jax.experimental import pallas as pl
from jax.experimental.pallas import tpu as pltpu


def se_res_kernel(x_ref, w1_lane_ref, w1_chan_ref, w2_chan_ref, b2_ref, b1_ref,
                  o_ref):
    x = x_ref[...]                               # (tb, C, W) f32, W on lanes
    b1 = b1_ref[0]                               # Squeeze bias (scalar, SMEM)

    # Squeeze Linear #1 along the W (lane) axis: VPU multiply + XLU lane-reduce.
    y1 = jnp.sum(x * w1_lane_ref[...], axis=-1, keepdims=True) + b1      # (tb, C, 1)

    # Flatten + Squeeze Linear #2: per-batch weighted reduction over channels
    # (sublane axis) -- replaces v1's dense (B, R) block-diagonal matmul.
    z = jnp.sum(y1 * w1_chan_ref[...], axis=1, keepdims=True) + b1       # (tb, 1, 1)
    z = jnp.maximum(z, 0.0)                                              # ReLU

    # Excite Linear: rank-1 per-channel expansion (no dense (R, B) matrix).
    e = z * w2_chan_ref[...] + b2_ref[...]                               # (tb, C, 1)

    # Sigmoid: exp lands on the EUP; the divide touches only the tiny
    # (tb, C, 1) slab, so it is negligible in this HBM-bound kernel.
    gate = 1.0 / (1.0 + jnp.exp(-e))                                     # (tb, C, 1)

    # Channel gating: lane-broadcast multiply against the skip connection.
    o_ref[...] = (gate * x).astype(o_ref.dtype)


def se_res_forward(x, W1, b1, W2, b2, *, batch_tile=None):
    """x: (B, C, H, W) NCHW f32.  W1:(sq,units), b1:(sq,), W2:(units,sq), b2:(units,)."""
    B, C, H, Wd = x.shape
    sq, units = W1.shape
    # Shape family for which the PyTorch forward is well defined.
    assert Wd == units and C == units and H == 1 and sq == 1 and C * H * sq == units

    x3 = x.reshape(B, C, Wd).astype(jnp.float32)          # H == 1 squeezed out

    # O(C) parameter vectors, pre-shaped for their in-kernel layout (glue only).
    w1_lane = W1[0, :].reshape(1, 1, Wd).astype(jnp.float32)   # lane-axis weights
    w1_chan = W1[0, :].reshape(1, C, 1).astype(jnp.float32)    # channel-axis weights
    w2_chan = W2[:, 0].reshape(1, C, 1).astype(jnp.float32)    # excite weights
    b2_chan = b2.reshape(1, C, 1).astype(jnp.float32)          # excite bias
    b1_s = b1.reshape(1).astype(jnp.float32)                   # Squeeze bias (SMEM)

    # Batch-tile choice: x + out tiles, double-buffered, under a conservative
    # VMEM budget so the same code fits v5e's 16 MiB scoped default and v7x's
    # 64 MiB physical VMEM.  tb must divide B so each tile is batch-aligned.
    if batch_tile is None:
        vmem_budget = 8 * 1024 * 1024
        per_batch_bytes = 2 * 2 * C * Wd * 4    # (x + out) * double-buffer * f32
        batch_tile = max(1, vmem_budget // per_batch_bytes)
    tb = int(min(batch_tile, B))
    while B % tb:
        tb -= 1

    out3 = pl.pallas_call(
        se_res_kernel,
        out_shape=jax.ShapeDtypeStruct((B, C, Wd), jnp.float32),
        grid=(B // tb,),
        in_specs=[
            pl.BlockSpec((tb, C, Wd), lambda i: (i, 0, 0)),          # x tile
            pl.BlockSpec((1, 1, Wd), lambda i: (0, 0, 0)),           # w1 (lane)
            pl.BlockSpec((1, C, 1), lambda i: (0, 0, 0)),            # w1 (chan)
            pl.BlockSpec((1, C, 1), lambda i: (0, 0, 0)),            # w2 (chan)
            pl.BlockSpec((1, C, 1), lambda i: (0, 0, 0)),            # b2 (chan)
            pl.BlockSpec(memory_space=pltpu.MemorySpace.SMEM),       # b1 scalar
        ],
        out_specs=pl.BlockSpec((tb, C, Wd), lambda i: (i, 0, 0)),
        compiler_params=pltpu.CompilerParams(
            dimension_semantics=("parallel",),   # shards tiles across v7x's 2 TCs
        ),
        # NOTE: input_output_aliases={0: 0} could reuse x's HBM buffer when the
        # caller donates x; left off here because main() reuses x afterwards.
    )(x3, w1_lane, w1_chan, w2_chan, b2_chan, b1_s)

    return out3.reshape(B, C, H, Wd)


def se_res_reference(x, W1, b1, W2, b2):
    """Pure-JAX transcription of the PyTorch forward, for verification."""
    hi = jax.lax.Precision.HIGHEST
    a = jnp.einsum('bchw,sw->bchs', x, W1, precision=hi) + b1   # Linear over last dim
    f = a.reshape(x.shape[0], -1)                               # Flatten
    z = jnp.dot(f, W1.T, precision=hi) + b1                     # Squeeze linear again
    z = jnp.maximum(z, 0.0)                                     # ReLU
    e = jnp.dot(z, W2.T, precision=hi) + b2                     # excite
    g = jax.nn.sigmoid(e)
    return g[..., None, None] * x


if __name__ == "__main__":
    units = 128         # channel count == feature width; multiple of 128 -> lane-dense
    sqfactor = units    # -> sq_units = 1 (the only shape-consistent configuration)
    sq_units = units // sqfactor
    B, C, H, W = 8, units, 1, units

    key = jax.random.PRNGKey(0)
    kx, kw1, kb1, kw2, kb2 = jax.random.split(key, 5)
    x = jax.random.normal(kx, (B, C, H, W), dtype=jnp.float32)
    W1 = 0.2 * jax.random.normal(kw1, (sq_units, units), dtype=jnp.float32)  # Squeeze.weight
    b1 = 0.1 * jax.random.normal(kb1, (sq_units,), dtype=jnp.float32)        # Squeeze.bias
    W2 = 0.2 * jax.random.normal(kw2, (units, sq_units), dtype=jnp.float32)  # exite.weight
    b2 = 0.1 * jax.random.normal(kb2, (units,), dtype=jnp.float32)           # exite.bias

    out = se_res_forward(x, W1, b1, W2, b2, batch_tile=4)   # grid=(2,): pipelined
    out = jax.block_until_ready(out)

    ref = se_res_reference(x, W1, b1, W2, b2)
    assert out.shape == ref.shape == (B, C, H, W)
    # Tolerance covers f32 reduction-order differences (XLU reduce vs einsum).
    assert bool(jnp.allclose(out, ref, rtol=2e-5, atol=2e-5)), "mismatch vs reference"

    print("KERNEL_OK")
</pallas_src>

<mosaic_0001>
module attributes {stable_mosaic.version = 11 : i64} {
  func.func @se_res_kernel(%arg0: i32, %arg1: memref<4x128x128xf32, #tpu.memory_space<vmem>>, %arg2: memref<1x1x128xf32, #tpu.memory_space<vmem>>, %arg3: memref<1x128x1xf32, #tpu.memory_space<vmem>>, %arg4: memref<1x128x1xf32, #tpu.memory_space<vmem>>, %arg5: memref<1x128x1xf32, #tpu.memory_space<vmem>>, %arg6: memref<1xf32, #tpu.memory_space<smem>>, %arg7: memref<4x128x128xf32, #tpu.memory_space<vmem>>) attributes {dimension_semantics = [#tpu.dimension_semantics<parallel>], iteration_bounds = array<i64: 2>, scalar_prefetch = 0 : i64, scratch_operands = 0 : i64, tpu.core_type = #tpu.core_type<tc>, window_params = [{transform_indices = @transform_0, window_bounds = array<i64: 4, 128, 128>}, {pipeline_mode = #tpu.pipeline_mode<synchronous>, transform_indices = @transform_1, window_bounds = array<i64: 1, 1, 128>}, {pipeline_mode = #tpu.pipeline_mode<synchronous>, transform_indices = @transform_2, window_bounds = array<i64: 1, 128, 1>}, {pipeline_mode = #tpu.pipeline_mode<synchronous>, transform_indices = @transform_3, window_bounds = array<i64: 1, 128, 1>}, {pipeline_mode = #tpu.pipeline_mode<synchronous>, transform_indices = @transform_4, window_bounds = array<i64: 1, 128, 1>}, {transform_indices = @transform_5, window_bounds = array<i64: 1>}, {transform_indices = @transform_6, window_bounds = array<i64: 4, 128, 128>}]} {
    %c0 = arith.constant 0 : index
    %c0_0 = arith.constant 0 : index
    %c0_1 = arith.constant 0 : index
    %0 = vector.load %arg1[%c0, %c0_0, %c0_1] : memref<4x128x128xf32, #tpu.memory_space<vmem>>, vector<4x128x128xf32>
    %c0_2 = arith.constant 0 : index
    %1 = memref.load %arg6[%c0_2] : memref<1xf32, #tpu.memory_space<smem>>
    %c0_3 = arith.constant 0 : index
    %c0_4 = arith.constant 0 : index
    %c0_5 = arith.constant 0 : index
    %2 = vector.load %arg2[%c0_3, %c0_4, %c0_5] : memref<1x1x128xf32, #tpu.memory_space<vmem>>, vector<1x1x128xf32>
    %3 = vector.broadcast %2 : vector<1x1x128xf32> to vector<4x128x128xf32>
    %4 = arith.mulf %0, %3 : vector<4x128x128xf32>
    %cst = arith.constant dense<0.000000e+00> : vector<4x128xf32>
    %5 = vector.multi_reduction <add>, %4, %cst [2] : vector<4x128x128xf32> to vector<4x128xf32>
    %6 = vector.shape_cast %5 : vector<4x128xf32> to vector<4x128x1xf32>
    %7 = vector.broadcast %1 : f32 to vector<4x128x1xf32>
    %8 = arith.addf %6, %7 : vector<4x128x1xf32>
    %c0_6 = arith.constant 0 : index
    %c0_7 = arith.constant 0 : index
    %c0_8 = arith.constant 0 : index
    %9 = vector.load %arg3[%c0_6, %c0_7, %c0_8] : memref<1x128x1xf32, #tpu.memory_space<vmem>>, vector<1x128x1xf32>
    %10 = vector.broadcast %9 : vector<1x128x1xf32> to vector<4x128x1xf32>
    %11 = arith.mulf %8, %10 : vector<4x128x1xf32>
    %cst_9 = arith.constant dense<0.000000e+00> : vector<4x1xf32>
    %12 = vector.multi_reduction <add>, %11, %cst_9 [1] : vector<4x128x1xf32> to vector<4x1xf32>
    %13 = vector.shape_cast %12 : vector<4x1xf32> to vector<4x1x1xf32>
    %14 = vector.broadcast %1 : f32 to vector<4x1x1xf32>
    %15 = arith.addf %13, %14 : vector<4x1x1xf32>
    %cst_10 = arith.constant 0.000000e+00 : f32
    %16 = vector.broadcast %cst_10 : f32 to vector<4x1x1xf32>
    %17 = arith.maximumf %15, %16 : vector<4x1x1xf32>
    %c0_11 = arith.constant 0 : index
    %c0_12 = arith.constant 0 : index
    %c0_13 = arith.constant 0 : index
    %18 = vector.load %arg4[%c0_11, %c0_12, %c0_13] : memref<1x128x1xf32, #tpu.memory_space<vmem>>, vector<1x128x1xf32>
    %19 = vector.broadcast %17 : vector<4x1x1xf32> to vector<4x128x1xf32>
    %20 = vector.broadcast %18 : vector<1x128x1xf32> to vector<4x128x1xf32>
    %21 = arith.mulf %19, %20 : vector<4x128x1xf32>
    %c0_14 = arith.constant 0 : index
    %c0_15 = arith.constant 0 : index
    %c0_16 = arith.constant 0 : index
    %22 = vector.load %arg5[%c0_14, %c0_15, %c0_16] : memref<1x128x1xf32, #tpu.memory_space<vmem>>, vector<1x128x1xf32>
    %23 = vector.broadcast %22 : vector<1x128x1xf32> to vector<4x128x1xf32>
    %24 = arith.addf %21, %23 : vector<4x128x1xf32>
    %cst_17 = arith.constant 0.000000e+00 : f32
    %25 = vector.broadcast %cst_17 : f32 to vector<4x128x1xf32>
    %26 = arith.subf %25, %24 : vector<4x128x1xf32>
    %27 = math.exp %26 : vector<4x128x1xf32>
    %cst_18 = arith.constant 1.000000e+00 : f32
    %28 = vector.broadcast %cst_18 : f32 to vector<4x128x1xf32>
    %29 = arith.addf %28, %27 : vector<4x128x1xf32>
    %cst_19 = arith.constant 1.000000e+00 : f32
    %30 = vector.broadcast %cst_19 : f32 to vector<4x128x1xf32>
    %31 = arith.divf %30, %29 : vector<4x128x1xf32>
    %32 = vector.broadcast %31 : vector<4x128x1xf32> to vector<4x128x128xf32>
    %33 = arith.mulf %32, %0 : vector<4x128x128xf32>
    %c0_20 = arith.constant 0 : index
    %c0_21 = arith.constant 0 : index
    %c0_22 = arith.constant 0 : index
    %34 = vector.load %arg7[%c0_20, %c0_21, %c0_22] : memref<4x128x128xf32, #tpu.memory_space<vmem>>, vector<4x128x128xf32>
    tpu.vector_store %arg7[%c0_20, %c0_21, %c0_22], %33 {strides = array<i32>} : memref<4x128x128xf32, #tpu.memory_space<vmem>>, vector<4x128x128xf32>,
    return
  }
  func.func @transform_0(%arg0: i32) -> (i32, i32, i32) {
    %c0_i32 = arith.constant 0 : i32
    %c0_i32_0 = arith.constant 0 : i32
    %c0_i32_1 = arith.constant 0 : i32
    return %arg0, %c0_i32, %c0_i32_0 : i32, i32, i32
  }
  func.func @transform_1(%arg0: i32) -> (i32, i32, i32) {
    %c0_i32 = arith.constant 0 : i32
    %c0_i32_0 = arith.constant 0 : i32
    %c0_i32_1 = arith.constant 0 : i32
    %c0_i32_2 = arith.constant 0 : i32
    return %c0_i32, %c0_i32_0, %c0_i32_1 : i32, i32, i32
  }
  func.func @transform_2(%arg0: i32) -> (i32, i32, i32) {
    %c0_i32 = arith.constant 0 : i32
    %c0_i32_0 = arith.constant 0 : i32
    %c0_i32_1 = arith.constant 0 : i32
    %c0_i32_2 = arith.constant 0 : i32
    return %c0_i32, %c0_i32_0, %c0_i32_1 : i32, i32, i32
  }
  func.func @transform_3(%arg0: i32) -> (i32, i32, i32) {
    %c0_i32 = arith.constant 0 : i32
    %c0_i32_0 = arith.constant 0 : i32
    %c0_i32_1 = arith.constant 0 : i32
    %c0_i32_2 = arith.constant 0 : i32
    return %c0_i32, %c0_i32_0, %c0_i32_1 : i32, i32, i32
  }
  func.func @transform_4(%arg0: i32) -> (i32, i32, i32) {
    %c0_i32 = arith.constant 0 : i32
    %c0_i32_0 = arith.constant 0 : i32
    %c0_i32_1 = arith.constant 0 : i32
    %c0_i32_2 = arith.constant 0 : i32
    return %c0_i32, %c0_i32_0, %c0_i32_1 : i32, i32, i32
  }
  func.func @transform_5(%arg0: i32) -> i32 {
    %c0_i32 = arith.constant 0 : i32
    %c0_i32_0 = arith.constant 0 : i32
    return %c0_i32 : i32
  }
  func.func @transform_6(%arg0: i32) -> (i32, i32, i32) {
    %c0_i32 = arith.constant 0 : i32
    %c0_i32_0 = arith.constant 0 : i32
    %c0_i32_1 = arith.constant 0 : i32
    return %arg0, %c0_i32, %c0_i32_0 : i32, i32, i32
  }
}

</mosaic_0001>

<bundles_post_ra>
// kernel: tpu_custom_call.1
= control target key start
LH: loop header
LB: loop body
LE: loop exit
PB: predicated region body
PF: predicated region fallthrough
CT: control target
= control target key end

     0   :  { %s3638_s0 = inlined_call_operand.hbm [shape: f32[8,128,128], index: 0, kind: input, shape index: {}]   ;;  %s3639_s1 = inlined_call_operand.vmem [shape: f32[1,1,128], index: 1, kind: input, shape index: {}]   ;;  %s3640_s2 = inlined_call_operand.vmem [shape: f32[1,128,1], index: 2, kind: input, shape index: {}]   ;;  %s3641_s3 = inlined_call_operand.vmem [shape: f32[1,128,1], index: 3, kind: input, shape index: {}]   ;;  %s3642_s4 = inlined_call_operand.vmem [shape: f32[1,128,1], index: 4, kind: input, shape index: {}]   ;;  %s3643_s5 = inlined_call_operand.<no memory space> [shape: f32[1], index: 5, kind: input, shape index: {}]   ;;  %s3644_s6 = inlined_call_operand.hbm [shape: f32[8,128,128], index: 6, kind: output, shape index: {}]  }
   0x1   :  { %11 = sst [smem:[#allocation2]] %s3643_s5 }
   0x2   :  { %12 = vsyncpa [#allocation4], 0 }
   0x3   :  { %14 = vsyncpa [#allocation4 + $0x1], 0 }
   0x4   :  { %15 = vsyncpa [#allocation5], 0 }
   0x5   :  { %17 = vsyncpa [#allocation5 + $0x1], 0  ;;  %s2483_s23 = smov 0   ;;  %s2485_s24 = smov 0  }
   0x6   :  { %s2487_s25 = smov 0   ;;  %s2489_s26 = smov 0  }
   0x7 LB: > { %s2504_s5 = sadd.s32 4294967295, %s2436_s26   ;;  %s1920_s27 = sadd.s32 4294967294, %s2436_s26   ;;  %s2436_s26 = sphi %s2489_s26, %s3669_s26   ;;  %s2432_s25 = sphi %s2487_s25, %s3668_s25   ;;  %s2428_s24 = sphi %s2485_s24, %s3667_s24   ;;  %s2424_s23 = sphi %s2483_s23, %s3666_s23  }
   0x8   : > { %s2508_s28 = sadd.s32 1, %s2436_s26   ;;  %s30_s29 = sadd.s32 1, %s2432_s25 }
   0x9   : > { %s27_s30 = ssub.s32 %s2436_s26, %s2508_s28  ;;  %p37_p0 = scmp.ne.s32.totalorder %s2432_s25, %s2428_s24 }
   0xa   : > { %p28_p1 = scmp.eq.s32.totalorder %s27_s30, 0  ;;  %p38_p2 = scmp.eq.s32.totalorder %s2436_s26, 0 }
   0xb   : > { %p43_p3 = scmp.ne.s32.totalorder %s2428_s24, %s2424_s23  ;;  %p44_p4 = scmp.eq.s32.totalorder %s2504_s5, 0 }
   0xc   : > { %s2520_s7 = scalar_select %p28_p1, %s2432_s25, %s30_s29  }
   0xd   : > { %p2522_p5 = por %p38_p2, %p37_p0  ;;  %p2526_p6 = por %p44_p4, %p43_p3 }
   0xe   : > { %p172_p7 = scmp.eq.s32.totalorder %s2504_s5, 1  ;;  %p178_p8 = scmp.eq.s32.totalorder %s1920_s27, 1 }
   0xf   : > { %p1953_p10 = scmp.lt.s32.totalorder %s2436_s26, 2  ;;  %s213_s12 = sand.u32 1, %s2432_s25  }
  0x10   : > { %p2533_p11 = por %p172_p7, %p37_p0  ;;  %p2537_p12 = por %p178_p8, %p43_p3 }
  0x11   : > { %s1938_s13 = sshll.u32 %s2436_s26, 13  ;;  %s1923_s14 = sshll.u32 %s213_s12, 9 }
  0x12   : > { %s3654_s10 = scalar_select %p2533_p11, 1, 0 }
  0x13   : > { %s3655_s11 = scalar_select %p2537_p12, 1, 0 }
  0x14   : > { %s2546_s17 = scalar_lea.hbm %s3638_s0, %s1938_s13  ;;  %s217_s18 = scalar_lea.vmem [#allocation3], %s1923_s14 }
  0x15   : > { %s225_s19 = sshll.u32 %s217_s18, 4  ;;  %p2550_p13 = pnand %p1953_p10, %p2522_p5  ;;  %s2554_s19 = int_to_ptr.vmem [resolvable:$true] %s225_s19 }
  0x16   : > { %s2556_s21 = scalar_lea.sflag [#allocation4], %s213_s12  ;;  %s2340_s22 = scalar_lea.hbm %s2546_s17, 8192 }
  0x17   : > { %p2341_p0 = scmp.ne.s32.totalorder %s2546_s17, %s2340_s22  ;;  %p2342_p1 = pneg %p2550_p13 }
  0x18   : > { %s2345_s30 = scalar_lea.hbm %s3638_s0, 16384  ;;  %p2346_p4 = scmp.lt.u32.totalorder %s2546_s17, %s3638_s0 }
  0x19   : > { %p2343_p2 = pnand %p2342_p1, %p2341_p0  ;;  %p2347_p5 = scmp.lt.u32.totalorder %s2345_s30, %s2340_s22 }
  0x1a   : > { %p2349_p8 = scmp.lt.u32.totalorder %s2340_s22, %s2546_s17 }
  0x1b   : > { %p2344_p3 = pneg %p2343_p2  ;;  %p2348_p7 = por %p2347_p5, %p2346_p4 }
  0x1d   : > { %p2350_p10 = por %p2349_p8, %p2348_p7 }
  0x1f   : > { %p2351_p9 = pnand %p2350_p10, %p2344_p3 }
  0x21   : > { %2354 = shalt.err (!%p2351_p9)
}
  0x22   : > { %s2355_s12 = scalar_lea.vmem %s2554_s19, 8192  ;;  %s2438_s14 = smov [#allocation3]  }
  0x23   : > { %p2356_p0 = scmp.ne.s32.totalorder %s2554_s19, %s2355_s12  ;;  %s2360_s15 = sshll.u32 %s2438_s14, 4  ;;  %s2361_s15 = int_to_ptr.vmem [resolvable:$false] %s2360_s15 }
  0x24   : > { %s2362_s16 = scalar_lea.vmem %s2361_s15, 16384  ;;  %p2363_p11 = scmp.lt.s32.totalorder %s2554_s19, %s2361_s15 }
  0x25   : > { %p2358_p2 = pnand %p2356_p0, %p2342_p1  ;;  %p2364_p4 = scmp.lt.s32.totalorder %s2362_s16, %s2355_s12 }
  0x27   : > { %p2359_p12 = pneg %p2358_p2  ;;  %p2365_p5 = por %p2364_p4, %p2363_p11 }
  0x29   : > { %p2366_p7 = pnand %p2365_p5, %p2359_p12 }
  0x2b   : > { %2369 = shalt.err (!%p2366_p7)
}
  0x2c   : > { %s2439_s18 = smov 128   ;;  %s2440_s22 = smov 8  }
  0x2d   : > { %1948 = dma.hbm_to_vmem [thread:$0]  (!%p2550_p13), %s2546_s17, 8192, %s2554_s19, %s2556_s21, %s2439_s18, %s2439_s18, %s2440_s22  }
  0x2e   : > { %p1927_p9 = scmp.ge.s32.totalorder %s2436_s26, 1  ;;  %p233_p1 = scmp.lt.s32.totalorder %s2436_s26, 3 }
  0x30   : > { %p234_p3 = pnand %p1927_p9, %p233_p1 }
  0x32   : > { %237 = sbr.rel (%p234_p3) target bundleno = 615 (0x267), region = 44 }
  0x39   : > { %s2587_s27 = sand.u32 1, %s2428_s24  }
  0x3a   : > { %s1928_s29 = sshll.u32 %s2587_s27, 9  ;;  %s240_s30 = scalar_lea.sflag [#allocation4], %s2587_s27 }
  0x3b   : > { %s2593_s8 = scalar_lea.vmem [#allocation3], %s1928_s29 }
  0x3c   : > { %2415 = dma.done.wait (%p2526_p6), %s240_s30, 8192  }
  0x3d   : > { %2417 = vsyncadd (%p2526_p6), %s240_s30, 4294959104  ;;  %v274_v0 = vld [vmem:[%s2593_s8] sm:$0xff]  ;;  %v276_v2 = vld [vmem:[%s2593_s8 + $0x10] sm:$0xff]  ;;  %s338_s9 = sld [smem:[#allocation2]]  ;;  %vm683_vm0 = vcmask 7168   ;;  %s3440_s17 = scalar_lea.vmem [#allocation6], %s1928_s29 }
  0x3e   : > { %v2603_v1 = vld [vmem:[%s3639_s1] ss:$0 sm:$0xff]  ;;  %v275_v5 = vld [vmem:[%s2593_s8 + $0x8] sm:$0xff]  ;;  %v277_v6 = vld [vmem:[%s2593_s8 + $0x18] sm:$0xff]  ;;  %s1940_s15 = sshll.u32 %s2504_s5, 13  ;;  %s1847_s16 = sshll.u32 %s3440_s17, 4  ;;  %s3592_s16 = int_to_ptr.vmem [resolvable:$true] %s1847_s16 }
  0x3f   : > { %v346_v3 = vmul.f32 %v2603_v1, %v274_v0  ;;  %v348_v4 = vmul.f32 %v2603_v1, %v276_v2  ;;  %v347_v7 = vmul.f32 %v2603_v1, %v275_v5  ;;  %v349_v8 = vmul.f32 %v2603_v1, %v277_v6  ;;  %v278_v9 = vld [vmem:[%s2593_s8 + $0x20] sm:$0xff]  ;;  %v279_v10 = vld [vmem:[%s2593_s8 + $0x28] sm:$0xff]  ;;  %v280_v13 = vld [vmem:[%s2593_s8 + $0x30] sm:$0xff]  ;;  %s3590_s30 = scalar_lea.hbm %s3644_s6, %s1940_s15  ;;  %s1833_s19 = scalar_lea.sflag [#allocation5], %s2587_s27 }
  0x40   : > { %v350_v11 = vmul.f32 %v2603_v1, %v278_v9  ;;  %v351_v12 = vmul.f32 %v2603_v1, %v279_v10  ;;  %v281_v14 = vld [vmem:[%s2593_s8 + $0x38] sm:$0xff]  ;;  %v352_v15 = vmul.f32 %v2603_v1, %v280_v13  ;;  %v282_v17 = vld [vmem:[%s2593_s8 + $0x40] sm:$0xff]  ;;  %v283_v18 = vld [vmem:[%s2593_s8 + $0x48] sm:$0xff]  ;;  %p3663_p11 = scmp.ne.s32.totalorder %s3654_s10, 0  ;;  %s2442_s5 = smov [#allocation6]  }
  0x41   : > { %410 = vadd.xlane.f32.xlu0 %v346_v3  ;;  %414 = vadd.xlane.f32.xlu1 %v348_v4  ;;  %v353_v16 = vmul.f32 %v2603_v1, %v281_v14  ;;  %v354_v19 = vmul.f32 %v2603_v1, %v282_v17  ;;  %v355_v20 = vmul.f32 %v2603_v1, %v283_v18  ;;  %v284_v21 = vld [vmem:[%s2593_s8 + $0x50] sm:$0xff]  ;;  %v285_v22 = vld [vmem:[%s2593_s8 + $0x58] sm:$0xff]  ;;  %v286_v25 = vld [vmem:[%s2593_s8 + $0x60] sm:$0xff]  ;;  %s2374_s29 = sshll.u32 %s2442_s5, 4  ;;  %s2375_s29 = int_to_ptr.vmem [resolvable:$false] %s2374_s29 }
  0x42   : > { %v356_v23 = vmul.f32 %v2603_v1, %v284_v21  ;;  %v357_v24 = vmul.f32 %v2603_v1, %v285_v22  ;;  %v287_v26 = vld [vmem:[%s2593_s8 + $0x68] sm:$0xff]  ;;  %v358_v27 = vmul.f32 %v2603_v1, %v286_v25  ;;  %v288_v29 = vld [vmem:[%s2593_s8 + $0x70] sm:$0xff]  ;;  %v289_v30 = vld [vmem:[%s2593_s8 + $0x78] sm:$0xff]  ;;  %s2376_s20 = scalar_lea.vmem %s2375_s29, 16384  ;;  %p2377_p8 = scmp.lt.s32.totalorder %s3592_s16, %s2375_s29 }
  0x43   : > { %v359_v28 = vmul.f32 %v2603_v1, %v287_v26  ;;  %v360_v31 = vmul.f32 %v2603_v1, %v288_v29  ;;  %v361_v32 = vmul.f32 %v2603_v1, %v289_v30  ;;  %v290_v33 = vld [vmem:[%s2593_s8 + $0x80] sm:$0xff]  ;;  %v291_v34 = vld [vmem:[%s2593_s8 + $0x88] sm:$0xff]  ;;  %v292_v37 = vld [vmem:[%s2593_s8 + $0x90] sm:$0xff] }
  0x44   : > { %v362_v35 = vmul.f32 %v2603_v1, %v290_v33  ;;  %v363_v36 = vmul.f32 %v2603_v1, %v291_v34  ;;  %v293_v38 = vld [vmem:[%s2593_s8 + $0x98] sm:$0xff]  ;;  %v364_v39 = vmul.f32 %v2603_v1, %v292_v37  ;;  %v294_v41 = vld [vmem:[%s2593_s8 + $0xa0] sm:$0xff]  ;;  %v295_v42 = vld [vmem:[%s2593_s8 + $0xa8] sm:$0xff] }
  0x45   : > { %412 = vadd.xlane.f32.xlu0 %v347_v7  ;;  %416 = vadd.xlane.f32.xlu1 %v349_v8  ;;  %v365_v40 = vmul.f32 %v2603_v1, %v293_v38  ;;  %v366_v43 = vmul.f32 %v2603_v1, %v294_v41  ;;  %v367_v44 = vmul.f32 %v2603_v1, %v295_v42  ;;  %v296_v45 = vld [vmem:[%s2593_s8 + $0xb0] sm:$0xff]  ;;  %v297_v46 = vld [vmem:[%s2593_s8 + $0xb8] sm:$0xff]  ;;  %v298_v49 = vld [vmem:[%s2593_s8 + $0xc0] sm:$0xff] }
  0x46   : > { %v368_v47 = vmul.f32 %v2603_v1, %v296_v45  ;;  %v369_v48 = vmul.f32 %v2603_v1, %v297_v46  ;;  %v299_v50 = vld [vmem:[%s2593_s8 + $0xc8] sm:$0xff]  ;;  %v370_v51 = vmul.f32 %v2603_v1, %v298_v49  ;;  %v300_v53 = vld [vmem:[%s2593_s8 + $0xd0] sm:$0xff]  ;;  %v301_v54 = vld [vmem:[%s2593_s8 + $0xd8] sm:$0xff] }
  0x47   : > { %v371_v52 = vmul.f32 %v2603_v1, %v299_v50  ;;  %v372_v55 = vmul.f32 %v2603_v1, %v300_v53  ;;  %v373_v56 = vmul.f32 %v2603_v1, %v301_v54  ;;  %v302_v57 = vld [vmem:[%s2593_s8 + $0xe0] sm:$0xff]  ;;  %v303_v58 = vld [vmem:[%s2593_s8 + $0xe8] sm:$0xff]  ;;  %v304_v61 = vld [vmem:[%s2593_s8 + $0xf0] sm:$0xff] }
  0x48   : > { %v374_v59 = vmul.f32 %v2603_v1, %v302_v57  ;;  %v375_v60 = vmul.f32 %v2603_v1, %v303_v58  ;;  %v305_v62 = vld [vmem:[%s2593_s8 + $0xf8] sm:$0xff]  ;;  %v376_v63 = vmul.f32 %v2603_v1, %v304_v61  ;;  %v306_v2 = vld [vmem:[%s2593_s8 + $0x100] sm:$0xff]  ;;  %v307_v3 = vld [vmem:[%s2593_s8 + $0x108] sm:$0xff] }
  0x49   : > { %418 = vadd.xlane.f32.xlu0 %v350_v11  ;;  %420 = vadd.xlane.f32.xlu1 %v351_v12  ;;  %v377_v0 = vmul.f32 %v2603_v1, %v305_v62  ;;  %v378_v4 = vmul.f32 %v2603_v1, %v306_v2  ;;  %v379_v5 = vmul.f32 %v2603_v1, %v307_v3  ;;  %v308_v6 = vld [vmem:[%s2593_s8 + $0x110] sm:$0xff]  ;;  %v309_v7 = vld [vmem:[%s2593_s8 + $0x118] sm:$0xff]  ;;  %v310_v10 = vld [vmem:[%s2593_s8 + $0x120] sm:$0xff] }
  0x4a   : > { %v380_v8 = vmul.f32 %v2603_v1, %v308_v6  ;;  %v381_v9 = vmul.f32 %v2603_v1, %v309_v7  ;;  %v311_v11 = vld [vmem:[%s2593_s8 + $0x128] sm:$0xff]  ;;  %v382_v12 = vmul.f32 %v2603_v1, %v310_v10  ;;  %v312_v14 = vld [vmem:[%s2593_s8 + $0x130] sm:$0xff]  ;;  %v314_v18 = vld [vmem:[%s2593_s8 + $0x140] sm:$0xff] }
  0x4b   : > { %v383_v13 = vmul.f32 %v2603_v1, %v311_v11  ;;  %v316_v22 = vld [vmem:[%s2593_s8 + $0x150] sm:$0xff]  ;;  %v318_v26 = vld [vmem:[%s2593_s8 + $0x160] sm:$0xff]  ;;  %v2749_v10 = vld [vmem:[%s3640_s2 + $0x8] sm:$0xff] }
  0x4c   : > { %v320_v30 = vld [vmem:[%s2593_s8 + $0x170] sm:$0xff]  ;;  %v322_v34 = vld [vmem:[%s2593_s8 + $0x180] sm:$0xff] }
  0x4d   : > { %422 = vadd.xlane.f32.xlu0 %v352_v15  ;;  %424 = vadd.xlane.f32.xlu1 %v353_v16  ;;  %v313_v15 = vld [vmem:[%s2593_s8 + $0x138] sm:$0xff]  ;;  %v384_v16 = vmul.f32 %v2603_v1, %v312_v14  ;;  %v324_v38 = vld [vmem:[%s2593_s8 + $0x190] sm:$0xff]  ;;  %v326_v42 = vld [vmem:[%s2593_s8 + $0x1a0] sm:$0xff] }
  0x4e   : > { %v385_v17 = vmul.f32 %v2603_v1, %v313_v15  ;;  %v328_v46 = vld [vmem:[%s2593_s8 + $0x1b0] sm:$0xff] }
  0x4f   : > { %v400_v49 = vmul.f32 %v2603_v1, %v328_v46  ;;  %v2799_v46 = vld [vmem:[%s3640_s2 + $0x40] sm:$0xff] }
  0x51   : > { %426 = vadd.xlane.f32.xlu0 %v354_v19  ;;  %428 = vadd.xlane.f32.xlu1 %v355_v20  ;;  %v315_v19 = vld [vmem:[%s2593_s8 + $0x148] sm:$0xff]  ;;  %v386_v20 = vmul.f32 %v2603_v1, %v314_v18 }
  0x52   : > { %v387_v21 = vmul.f32 %v2603_v1, %v315_v19 }
  0x55   : > { %430 = vadd.xlane.f32.xlu0 %v356_v23  ;;  %432 = vadd.xlane.f32.xlu1 %v357_v24  ;;  %v317_v23 = vld [vmem:[%s2593_s8 + $0x158] sm:$0xff]  ;;  %v388_v24 = vmul.f32 %v2603_v1, %v316_v22  ;;  %v2770_v22 = vld [vmem:[%s3640_s2 + $0x28] sm:$0xff] }
  0x56   : > { %v389_v25 = vmul.f32 %v2603_v1, %v317_v23 }
  0x59   : > { %434 = vadd.xlane.f32.xlu0 %v358_v27  ;;  %436 = vadd.xlane.f32.xlu1 %v359_v28  ;;  %v319_v27 = vld [vmem:[%s2593_s8 + $0x168] sm:$0xff]  ;;  %v390_v28 = vmul.f32 %v2603_v1, %v318_v26 }
  0x5a   : > { %v391_v29 = vmul.f32 %v2603_v1, %v319_v27 }
  0x5d   : > { %438 = vadd.xlane.f32.xlu0 %v360_v31  ;;  %440 = vadd.xlane.f32.xlu1 %v361_v32  ;;  %v321_v31 = vld [vmem:[%s2593_s8 + $0x178] sm:$0xff]  ;;  %v392_v32 = vmul.f32 %v2603_v1, %v320_v30 }
  0x5e   : > { %v393_v33 = vmul.f32 %v2603_v1, %v321_v31 }
  0x61   : > { %442 = vadd.xlane.f32.xlu0 %v362_v35  ;;  %444 = vadd.xlane.f32.xlu1 %v363_v36  ;;  %v323_v35 = vld [vmem:[%s2593_s8 + $0x188] sm:$0xff]  ;;  %v394_v36 = vmul.f32 %v2603_v1, %v322_v34  ;;  %v2783_v34 = vld [vmem:[%s3640_s2 + $0x30] sm:$0xff] }
  0x62   : > { %v395_v37 = vmul.f32 %v2603_v1, %v323_v35 }
  0x65   : > { %446 = vadd.xlane.f32.xlu0 %v364_v39  ;;  %448 = vadd.xlane.f32.xlu1 %v365_v40  ;;  %v325_v39 = vld [vmem:[%s2593_s8 + $0x198] sm:$0xff]  ;;  %v396_v40 = vmul.f32 %v2603_v1, %v324_v38 }
  0x66   : > { %v397_v41 = vmul.f32 %v2603_v1, %v325_v39 }
  0x69   : > { %450 = vadd.xlane.f32.xlu0 %v366_v43  ;;  %452 = vadd.xlane.f32.xlu1 %v367_v44  ;;  %v327_v43 = vld [vmem:[%s2593_s8 + $0x1a8] sm:$0xff]  ;;  %v398_v44 = vmul.f32 %v2603_v1, %v326_v42 }
  0x6a   : > { %v399_v45 = vmul.f32 %v2603_v1, %v327_v43 }
  0x6d   : > { %454 = vadd.xlane.f32.xlu0 %v368_v47  ;;  %456 = vadd.xlane.f32.xlu1 %v369_v48  ;;  %v329_v47 = vld [vmem:[%s2593_s8 + $0x1b8] sm:$0xff]  ;;  %v2441_v48 = vmov 0  }
  0x6e   : > { %1993 = vset.pattern.permute.xlu1 %v2441_v48  ;;  %1992 = vset.pattern.permute.xlu0 %v2441_v48  ;;  %v401_v50 = vmul.f32 %v2603_v1, %v329_v47  ;;  %v2804_v48 = vld [vmem:[%s3640_s2 + $0x48] sm:$0xff] }
  0x71   : > { %458 = vadd.xlane.f32.xlu0 %v370_v51  ;;  %460 = vadd.xlane.f32.xlu1 %v371_v52  ;;  %v330_v51 = vld [vmem:[%s2593_s8 + $0x1c0] sm:$0xff]  ;;  %v331_v52 = vld [vmem:[%s2593_s8 + $0x1c8] sm:$0xff] }
  0x72   : > { %v402_v53 = vmul.f32 %v2603_v1, %v330_v51  ;;  %v403_v54 = vmul.f32 %v2603_v1, %v331_v52 }
  0x75   : > { %462 = vadd.xlane.f32.xlu0 %v372_v55  ;;  %464 = vadd.xlane.f32.xlu1 %v373_v56  ;;  %v332_v55 = vld [vmem:[%s2593_s8 + $0x1d0] sm:$0xff]  ;;  %v333_v56 = vld [vmem:[%s2593_s8 + $0x1d8] sm:$0xff] }
  0x76   : > { %v404_v57 = vmul.f32 %v2603_v1, %v332_v55  ;;  %v405_v58 = vmul.f32 %v2603_v1, %v333_v56 }
  0x79   : > { %466 = vadd.xlane.f32.xlu0 %v374_v59  ;;  %468 = vadd.xlane.f32.xlu1 %v375_v60  ;;  %v334_v59 = vld [vmem:[%s2593_s8 + $0x1e0] sm:$0xff]  ;;  %v335_v60 = vld [vmem:[%s2593_s8 + $0x1e8] sm:$0xff] }
  0x7a   : > { %v406_v61 = vmul.f32 %v2603_v1, %v334_v59  ;;  %v407_v62 = vmul.f32 %v2603_v1, %v335_v60  ;;  %v2820_v60 = vld [vmem:[%s3640_s2 + $0x58] sm:$0xff] }
  0x7d   : > { %470 = vadd.xlane.f32.xlu0 %v376_v63  ;;  %472 = vadd.xlane.f32.xlu1 %v377_v0  ;;  %v336_v63 = vld [vmem:[%s2593_s8 + $0x1f0] sm:$0xff]  ;;  %v337_v0 = vld [vmem:[%s2593_s8 + $0x1f8] sm:$0xff] }
  0x7e   : > { %v408_v2 = vmul.f32 %v2603_v1, %v336_v63  ;;  %v409_v3 = vmul.f32 %v2603_v1, %v337_v0  ;;  %v2744_v1 = vld [vmem:[%s3640_s2 + $0x10] sm:$0xff] }
  0x81   : > { %474 = vadd.xlane.f32.xlu0 %v378_v4  ;;  %476 = vadd.xlane.f32.xlu1 %v379_v5  ;;  %v2732_v4 = vstv %s338_s9  ;;  %s2370_s9 = scalar_lea.vmem %s3592_s16, 8192 }
  0x82   : > { %p2371_p6 = scmp.ne.s32.totalorder %s3592_s16, %s2370_s9  ;;  %p2378_p10 = scmp.lt.s32.totalorder %s2376_s20, %s2370_s9 }
  0x84   : > { %p2372_p12 = pnand %p2371_p6, %p3663_p11  ;;  %p2379_p0 = por %p2378_p10, %p2377_p8 }
  0x85   : > { %478 = vadd.xlane.f32.xlu0 %v380_v8  ;;  %480 = vadd.xlane.f32.xlu1 %v381_v9  ;;  %v2738_v8 = vld [vmem:[%s3640_s2] sm:$0xff] }
  0x86   : > { %p2373_p13 = pneg %p2372_p12 }
  0x88   : > { %p2380_p2 = pnand %p2379_p0, %p2373_p13 }
  0x89   : > { %482 = vadd.xlane.f32.xlu0 %v382_v12  ;;  %484 = vadd.xlane.f32.xlu1 %v383_v13  ;;  %v2754_v12 = vld [vmem:[%s3640_s2 + $0x18] sm:$0xff] }
  0x8d   : > { %486 = vadd.xlane.f32.xlu0 %v384_v16  ;;  %488 = vadd.xlane.f32.xlu1 %v385_v17 }
  0x91   : > { %490 = vadd.xlane.f32.xlu0 %v386_v20  ;;  %492 = vadd.xlane.f32.xlu1 %v387_v21  ;;  %v2765_v20 = vld [vmem:[%s3640_s2 + $0x20] sm:$0xff] }
  0x95   : > { %494 = vadd.xlane.f32.xlu0 %v388_v24  ;;  %496 = vadd.xlane.f32.xlu1 %v389_v25 }
  0x99   : > { %498 = vadd.xlane.f32.xlu0 %v390_v28  ;;  %500 = vadd.xlane.f32.xlu1 %v391_v29 }
  0x9d   : > { %502 = vadd.xlane.f32.xlu0 %v392_v32  ;;  %504 = vadd.xlane.f32.xlu1 %v393_v33 }
  0xa1   : > { %506 = vadd.xlane.f32.xlu0 %v394_v36  ;;  %508 = vadd.xlane.f32.xlu1 %v395_v37  ;;  %v2788_v36 = vld [vmem:[%s3640_s2 + $0x38] sm:$0xff] }
  0xa5   : > { %510 = vadd.xlane.f32.xlu0 %v396_v40  ;;  %512 = vadd.xlane.f32.xlu1 %v397_v41 }
  0xa9   : > { %514 = vadd.xlane.f32.xlu0 %v398_v44  ;;  %516 = vadd.xlane.f32.xlu1 %v399_v45 }
  0xad   : > { %518 = vadd.xlane.f32.xlu0 %v400_v49  ;;  %520 = vadd.xlane.f32.xlu1 %v401_v50 }
  0xb1   : > { %522 = vadd.xlane.f32.xlu0 %v402_v53  ;;  %524 = vadd.xlane.f32.xlu1 %v403_v54 }
  0xb5   : > { %526 = vadd.xlane.f32.xlu0 %v404_v57  ;;  %528 = vadd.xlane.f32.xlu1 %v405_v58  ;;  %v2815_v58 = vld [vmem:[%s3640_s2 + $0x50] sm:$0xff] }
  0xb9   : > { %530 = vadd.xlane.f32.xlu0 %v406_v61  ;;  %532 = vadd.xlane.f32.xlu1 %v407_v62 }
  0xbd   : > { %534 = vadd.xlane.f32.xlu0 %v408_v2  ;;  %536 = vadd.xlane.f32.xlu1 %v409_v3 }
  0xce   : > { %v411_v5 = vpop.xlane.xlu0 %410  ;;  %v415_v6 = vpop.xlane.xlu1 %414 }
  0xcf   : > { %v539_v7 = vadd.f32 %v2732_v4, %v411_v5  ;;  %v541_v9 = vadd.f32 %v2732_v4, %v415_v6 }
  0xd1   : > { %v619_v14 = vmul.f32 %v2738_v8, %v539_v7  ;;  %v621_v17 = vmul.f32 %v2744_v1, %v541_v9  ;;  %v2831_v9 = vld [vmem:[%s3640_s2 + $0x60] sm:$0xff] }
  0xd2   : > { %v413_v11 = vpop.xlane.xlu0 %412  ;;  %v417_v13 = vpop.xlane.xlu1 %416 }
  0xd3   : > { %v540_v15 = vadd.f32 %v2732_v4, %v413_v11  ;;  %v542_v16 = vadd.f32 %v2732_v4, %v417_v13  ;;  %v684_v24 = vsel %vm683_vm0, %v619_v14, 0.0  ;;  %v687_v29 = vsel %vm683_vm0, %v621_v17, 0.0  ;;  %v2836_v13 = vld [vmem:[%s3640_s2 + $0x68] sm:$0xff] }
  0xd5   : > { %v620_v18 = vmul.f32 %v2749_v10, %v540_v15  ;;  %v622_v19 = vmul.f32 %v2754_v12, %v542_v16 }
  0xd6   : > { %v419_v21 = vpop.xlane.xlu0 %418  ;;  %v421_v23 = vpop.xlane.xlu1 %420 }
  0xd7   : > { %v685_v25 = vsel %vm683_vm0, %v620_v18, 0.0  ;;  %v543_v26 = vadd.f32 %v2732_v4, %v419_v21  ;;  %v544_v27 = vadd.f32 %v2732_v4, %v421_v23  ;;  %v689_v30 = vsel %vm683_vm0, %v622_v19, 0.0 }
  0xd8   : > { %v686_v28 = vadd.f32 %v685_v25, %v684_v24  ;;  %v2847_v25 = vld [vmem:[%s3640_s2 + $0x70] sm:$0xff] }
  0xd9   : > { %v623_v31 = vmul.f32 %v2765_v20, %v543_v26  ;;  %v624_v32 = vmul.f32 %v2770_v22, %v544_v27  ;;  %v2852_v27 = vld [vmem:[%s3640_s2 + $0x78] sm:$0xff] }
  0xda   : > { %v688_v33 = vadd.f32 %v687_v29, %v686_v28  ;;  %v423_v35 = vpop.xlane.xlu0 %422  ;;  %v425_v37 = vpop.xlane.xlu1 %424 }
  0xdb   : > { %v691_v38 = vsel %vm683_vm0, %v623_v31, 0.0  ;;  %v545_v39 = vadd.f32 %v2732_v4, %v423_v35  ;;  %v546_v40 = vadd.f32 %v2732_v4, %v425_v37  ;;  %v693_v42 = vsel %vm683_vm0, %v624_v32, 0.0 }
  0xdc   : > { %v690_v41 = vadd.f32 %v689_v30, %v688_v33 }
  0xdd   : > { %v625_v43 = vmul.f32 %v2783_v34, %v545_v39  ;;  %v626_v44 = vmul.f32 %v2788_v36, %v546_v40 }
  0xde   : > { %v692_v45 = vadd.f32 %v691_v38, %v690_v41  ;;  %v427_v47 = vpop.xlane.xlu0 %426  ;;  %v429_v49 = vpop.xlane.xlu1 %428 }
  0xdf   : > { %v695_v50 = vsel %vm683_vm0, %v625_v43, 0.0  ;;  %v547_v51 = vadd.f32 %v2732_v4, %v427_v47  ;;  %v548_v52 = vadd.f32 %v2732_v4, %v429_v49  ;;  %v697_v54 = vsel %vm683_vm0, %v626_v44, 0.0 }
  0xe0   : > { %v694_v53 = vadd.f32 %v693_v42, %v692_v45 }
  0xe1   : > { %v627_v55 = vmul.f32 %v2799_v46, %v547_v51  ;;  %v628_v56 = vmul.f32 %v2804_v48, %v548_v52 }
  0xe2   : > { %v696_v57 = vadd.f32 %v695_v50, %v694_v53  ;;  %v431_v59 = vpop.xlane.xlu0 %430  ;;  %v433_v61 = vpop.xlane.xlu1 %432 }
  0xe3   : > { %v699_v62 = vsel %vm683_vm0, %v627_v55, 0.0  ;;  %v549_v63 = vadd.f32 %v2732_v4, %v431_v59  ;;  %v550_v0 = vadd.f32 %v2732_v4, %v433_v61  ;;  %v701_v3 = vsel %vm683_vm0, %v628_v56, 0.0 }
  0xe4   : > { %v698_v2 = vadd.f32 %v697_v54, %v696_v57 }
  0xe5   : > { %v629_v5 = vmul.f32 %v2815_v58, %v549_v63  ;;  %v630_v6 = vmul.f32 %v2820_v60, %v550_v0 }
  0xe6   : > { %v700_v7 = vadd.f32 %v699_v62, %v698_v2  ;;  %v435_v11 = vpop.xlane.xlu0 %434  ;;  %v437_v14 = vpop.xlane.xlu1 %436 }
  0xe7   : > { %v703_v15 = vsel %vm683_vm0, %v629_v5, 0.0  ;;  %v551_v16 = vadd.f32 %v2732_v4, %v435_v11  ;;  %v552_v17 = vadd.f32 %v2732_v4, %v437_v14  ;;  %v705_v19 = vsel %vm683_vm0, %v630_v6, 0.0 }
  0xe8   : > { %v702_v18 = vadd.f32 %v701_v3, %v700_v7 }
  0xe9   : > { %v631_v21 = vmul.f32 %v2831_v9, %v551_v16  ;;  %v632_v23 = vmul.f32 %v2836_v13, %v552_v17 }
  0xea   : > { %v704_v24 = vadd.f32 %v703_v15, %v702_v18  ;;  %v439_v26 = vpop.xlane.xlu0 %438  ;;  %v441_v28 = vpop.xlane.xlu1 %440 }
  0xeb   : > { %v707_v29 = vsel %vm683_vm0, %v631_v21, 0.0  ;;  %v553_v30 = vadd.f32 %v2732_v4, %v439_v26  ;;  %v554_v31 = vadd.f32 %v2732_v4, %v441_v28  ;;  %v709_v33 = vsel %vm683_vm0, %v632_v23, 0.0 }
  0xec   : > { %v706_v32 = vadd.f32 %v705_v19, %v704_v24 }
  0xed   : > { %v633_v35 = vmul.f32 %v2847_v25, %v553_v30  ;;  %v634_v37 = vmul.f32 %v2852_v27, %v554_v31 }
  0xee   : > { %v708_v38 = vadd.f32 %v707_v29, %v706_v32  ;;  %v443_v39 = vpop.xlane.xlu0 %442  ;;  %v445_v40 = vpop.xlane.xlu1 %444 }
  0xef   : > { %v711_v41 = vsel %vm683_vm0, %v633_v35, 0.0  ;;  %v555_v42 = vadd.f32 %v2732_v4, %v443_v39  ;;  %v556_v43 = vadd.f32 %v2732_v4, %v445_v40  ;;  %v713_v45 = vsel %vm683_vm0, %v634_v37, 0.0 }
  0xf0   : > { %v710_v44 = vadd.f32 %v709_v33, %v708_v38 }
  0xf1   : > { %v635_v47 = vmul.f32 %v2738_v8, %v555_v42  ;;  %v636_v49 = vmul.f32 %v2749_v10, %v556_v43 }
  0xf2   : > { %v712_v50 = vadd.f32 %v711_v41, %v710_v44  ;;  %v447_v51 = vpop.xlane.xlu0 %446  ;;  %v449_v52 = vpop.xlane.xlu1 %448 }
  0xf3   : > { %v721_v53 = vsel %vm683_vm0, %v635_v47, 0.0  ;;  %v722_v54 = vsel %vm683_vm0, %v636_v49, 0.0  ;;  %v557_v55 = vadd.f32 %v2732_v4, %v447_v51  ;;  %v558_v56 = vadd.f32 %v2732_v4, %v449_v52 }
  0xf4   : > { %v714_v57 = vadd.f32 %v713_v45, %v712_v50  ;;  %v723_v59 = vadd.f32 %v722_v54, %v721_v53 }
  0xf5   : > { %v637_v61 = vmul.f32 %v2744_v1, %v557_v55  ;;  %v638_v62 = vmul.f32 %v2754_v12, %v558_v56 }
  0xf6   : > { %v715_v63 = vrot.slane %v714_v57, 4  ;;  %v451_v0 = vpop.xlane.xlu0 %450  ;;  %v453_v2 = vpop.xlane.xlu1 %452 }
  0xf7   : > { %v724_v3 = vsel %vm683_vm0, %v637_v61, 0.0  ;;  %v726_v5 = vsel %vm683_vm0, %v638_v62, 0.0  ;;  %v559_v6 = vadd.f32 %v2732_v4, %v451_v0  ;;  %v560_v7 = vadd.f32 %v2732_v4, %v453_v2  ;;  %v2908_v61 = vld [vmem:[%s3641_s3 + $0x10] sm:$0xff] }
  0xf8   : > { %v716_v11 = vadd.f32 %v715_v63, %v714_v57  ;;  %v725_v14 = vadd.f32 %v724_v3, %v723_v59  ;;  %v2898_v57 = vld [vmem:[%s3641_s3 + $0x8] sm:$0xff]  ;;  %v2903_v59 = vld [vmem:[%s3641_s3] sm:$0xff] }
  0xf9   : > { %v639_v15 = vmul.f32 %v2765_v20, %v559_v6  ;;  %v640_v16 = vmul.f32 %v2770_v22, %v560_v7  ;;  %v2917_v3 = vld [vmem:[%s3642_s4 + $0x8] sm:$0xff]  ;;  %v2927_v6 = vld [vmem:[%s3642_s4 + $0x10] sm:$0xff] }
  0xfa   : > { %v717_v17 = vrot.slane %v716_v11, 2  ;;  %v727_v18 = vadd.f32 %v726_v5, %v725_v14  ;;  %v455_v19 = vpop.xlane.xlu0 %454  ;;  %v457_v21 = vpop.xlane.xlu1 %456  ;;  %v2922_v5 = vld [vmem:[%s3642_s4] sm:$0xff] }
  0xfb   : > { %v728_v23 = vsel %vm683_vm0, %v639_v15, 0.0  ;;  %v730_v24 = vsel %vm683_vm0, %v640_v16, 0.0  ;;  %v561_v26 = vadd.f32 %v2732_v4, %v455_v19  ;;  %v562_v28 = vadd.f32 %v2732_v4, %v457_v21  ;;  %v2943_v19 = vld [vmem:[%s3641_s3 + $0x18] sm:$0xff] }
  0xfc   : > { %v718_v29 = vadd.f32 %v717_v17, %v716_v11  ;;  %v729_v30 = vadd.f32 %v728_v23, %v727_v18  ;;  %v2938_v18 = vld [vmem:[%s3641_s3 + $0x48] sm:$0xff] }
  0xfd   : > { %v641_v31 = vmul.f32 %v2783_v34, %v561_v26  ;;  %v642_v32 = vmul.f32 %v2788_v36, %v562_v28 }
  0xfe   : > { %v719_v33 = vrot.slane %v718_v29, 1  ;;  %v731_v35 = vadd.f32 %v730_v24, %v729_v30  ;;  %v459_v37 = vpop.xlane.xlu0 %458  ;;  %v461_v38 = vpop.xlane.xlu1 %460 }
  0xff   : > { %v732_v39 = vsel %vm683_vm0, %v641_v31, 0.0  ;;  %v734_v40 = vsel %vm683_vm0, %v642_v32, 0.0  ;;  %v563_v41 = vadd.f32 %v2732_v4, %v459_v37  ;;  %v564_v42 = vadd.f32 %v2732_v4, %v461_v38 }
 0x100   : > { %v720_v43 = vadd.f32 %v719_v33, %v718_v29  ;;  %v733_v44 = vadd.f32 %v732_v39, %v731_v35 }
 0x101   : > { %v643_v45 = vmul.f32 %v2799_v46, %v563_v41  ;;  %v644_v47 = vmul.f32 %v2804_v48, %v564_v42 }
 0x102   : > { %v832_v49 = vadd.f32 %v720_v43, %v2732_v4  ;;  %v735_v50 = vadd.f32 %v734_v40, %v733_v44  ;;  %v463_v51 = vpop.xlane.xlu0 %462  ;;  %v465_v52 = vpop.xlane.xlu1 %464  ;;  %v2961_v44 = vld [vmem:[%s3642_s4 + $0x48] sm:$0xff] }
 0x103   : > { %v736_v53 = vsel %vm683_vm0, %v643_v45, 0.0  ;;  %v738_v54 = vsel %vm683_vm0, %v644_v47, 0.0  ;;  %v565_v55 = vadd.f32 %v2732_v4, %v463_v51  ;;  %v566_v56 = vadd.f32 %v2732_v4, %v465_v52  ;;  %v2966_v45 = vld [vmem:[%s3642_s4 + $0x18] sm:$0xff] }
 0x104   : > { %v2910_v62 = vmax.f32 %v832_v49, 0.0  ;;  %v737_v63 = vadd.f32 %v736_v53, %v735_v50  ;;  %v2975_v52 = vld [vmem:[%s3641_s3 + $0x58] sm:$0xff]  ;;  %v2980_v53 = vld [vmem:[%s3641_s3 + $0x20] sm:$0xff] }
 0x105   : > { %v645_v0 = vmul.f32 %v2815_v58, %v565_v55  ;;  %v646_v2 = vmul.f32 %v2820_v60, %v566_v56 }
 0x106   : > { %v739_v7 = vadd.f32 %v738_v54, %v737_v63  ;;  %v467_v11 = vpop.xlane.xlu0 %466  ;;  %v469_v14 = vpop.xlane.xlu1 %468  ;;  %v857_v15 = vmul.f32 %v2898_v57, %v2910_v62  ;;  %v856_v16 = vmul.f32 %v2903_v59, %v2910_v62  ;;  %v858_v17 = vmul.f32 %v2908_v61, %v2910_v62 }
 0x107   : > { %v740_v21 = vsel %vm683_vm0, %v645_v0, 0.0  ;;  %v742_v23 = vsel %vm683_vm0, %v646_v2, 0.0  ;;  %v567_v24 = vadd.f32 %v2732_v4, %v467_v11  ;;  %v568_v26 = vadd.f32 %v2732_v4, %v469_v14 }
 0x108   : > { %v741_v28 = vadd.f32 %v740_v21, %v739_v7  ;;  %v937_v29 = vadd.f32 %v2917_v3, %v857_v15  ;;  %v936_v30 = vadd.f32 %v2922_v5, %v856_v16  ;;  %v938_v31 = vadd.f32 %v2927_v6, %v858_v17  ;;  %v2991_v21 = vld [vmem:[%s3642_s4 + $0x58] sm:$0xff] }
 0x109   : > { %v647_v32 = vmul.f32 %v2831_v9, %v567_v24  ;;  %v648_v33 = vmul.f32 %v2836_v13, %v568_v26  ;;  %v865_v35 = vmul.f32 %v2938_v18, %v2910_v62  ;;  %v859_v37 = vmul.f32 %v2943_v19, %v2910_v62 }
 0x10a   : > { %v743_v38 = vadd.f32 %v742_v23, %v741_v28  ;;  %v471_v39 = vpop.xlane.xlu0 %470  ;;  %v473_v40 = vpop.xlane.xlu1 %472  ;;  %v1001_v41 = vsub.f32 0.0, %v937_v29  ;;  %v1000_v42 = vsub.f32 0.0, %v936_v30  ;;  %v1002_v43 = vsub.f32 0.0, %v938_v31  ;;  %v3002_v30 = vld [vmem:[%s3642_s4 + $0x20] sm:$0xff] }
 0x10b   : > { %v744_v47 = vsel %vm683_vm0, %v647_v32, 0.0  ;;  %v746_v49 = vsel %vm683_vm0, %v648_v33, 0.0  ;;  %v569_v50 = vadd.f32 %v2732_v4, %v471_v39  ;;  %v570_v51 = vadd.f32 %v2732_v4, %v473_v40 }
 0x10c   : > { %v745_v54 = vadd.f32 %v744_v47, %v743_v38  ;;  %v1066_v55 = vmul.f32 1.442695, %v1001_v41  ;;  %v1064_v56 = vmul.f32 1.442695, %v1000_v42  ;;  %v1068_v63 = vmul.f32 1.442695, %v1002_v43 }
 0x10d   : > { %v649_v0 = vmul.f32 %v2847_v25, %v569_v50  ;;  %v650_v2 = vmul.f32 %v2852_v27, %v570_v51  ;;  %v945_v7 = vadd.f32 %v2961_v44, %v865_v35  ;;  %v939_v11 = vadd.f32 %v2966_v45, %v859_v37 }
 0x10e   : > { %v747_v14 = vadd.f32 %v746_v49, %v745_v54  ;;  %v475_v15 = vpop.xlane.xlu0 %474  ;;  %v477_v16 = vpop.xlane.xlu1 %476  ;;  %1994 = vpow2.f32 %v1066_v55  ;;  %v867_v17 = vmul.f32 %v2975_v52, %v2910_v62  ;;  %v860_v23 = vmul.f32 %v2980_v53, %v2910_v62  ;;  %v3015_v55 = vld [vmem:[%s3641_s3 + $0x68] sm:$0xff] }
 0x10f   : > { %v748_v24 = vsel %vm683_vm0, %v649_v0, 0.0  ;;  %v750_v26 = vsel %vm683_vm0, %v650_v2, 0.0  ;;  %v571_v28 = vadd.f32 %v2732_v4, %v475_v15  ;;  %v572_v29 = vadd.f32 %v2732_v4, %v477_v16 }
 0x110   : > { %v749_v31 = vadd.f32 %v748_v24, %v747_v14  ;;  %1996 = vpow2.f32 %v1064_v56  ;;  %v1009_v32 = vsub.f32 0.0, %v945_v7  ;;  %v1003_v33 = vsub.f32 0.0, %v939_v11  ;;  %v3020_v56 = vld [vmem:[%s3641_s3 + $0x28] sm:$0xff] }
 0x111   : > { %v651_v35 = vmul.f32 %v2738_v8, %v571_v28  ;;  %v652_v37 = vmul.f32 %v2749_v10, %v572_v29  ;;  %1998 = vpow2.f32 %v1068_v63  ;;  %v947_v38 = vadd.f32 %v2991_v21, %v867_v17 }
 0x112   : > { %v751_v39 = vadd.f32 %v750_v26, %v749_v31  ;;  %v479_v40 = vpop.xlane.xlu0 %478  ;;  %v481_v41 = vpop.xlane.xlu1 %480  ;;  %v1082_v42 = vmul.f32 1.442695, %v1009_v32  ;;  %v1070_v43 = vmul.f32 1.442695, %v1003_v33  ;;  %v940_v47 = vadd.f32 %v3002_v30, %v860_v23  ;;  %v3029_v26 = vld [vmem:[%s3642_s4 + $0x68] sm:$0xff] }
 0x113   : > { %v758_v49 = vsel %vm683_vm0, %v651_v35, 0.0  ;;  %v759_v50 = vsel %vm683_vm0, %v652_v37, 0.0  ;;  %v573_v51 = vadd.f32 %v2732_v4, %v479_v40  ;;  %v574_v54 = vadd.f32 %v2732_v4, %v481_v41  ;;  %v3040_v35 = vld [vmem:[%s3642_s4 + $0x28] sm:$0xff] }
 0x114   : > { %v752_v63 = vrot.slane %v751_v39, 4  ;;  %v760_v0 = vadd.f32 %v759_v50, %v758_v49  ;;  %2000 = vpow2.f32 %v1082_v42  ;;  %v1011_v2 = vsub.f32 0.0, %v947_v38 }
 0x115   : > { %v653_v7 = vmul.f32 %v2744_v1, %v573_v51  ;;  %v654_v11 = vmul.f32 %v2754_v12, %v574_v54  ;;  %2002 = vpow2.f32 %v1070_v43  ;;  %v1004_v14 = vsub.f32 0.0, %v940_v47 }
 0x116   : > { %v753_v15 = vadd.f32 %v752_v63, %v751_v39  ;;  %v483_v16 = vpop.xlane.xlu0 %482  ;;  %v485_v17 = vpop.xlane.xlu1 %484  ;;  %v1086_v23 = vmul.f32 1.442695, %v1011_v2  ;;  %v869_v24 = vmul.f32 %v3015_v55, %v2910_v62  ;;  %v861_v28 = vmul.f32 %v3020_v56, %v2910_v62 }
 0x117   : > { %v761_v29 = vsel %vm683_vm0, %v653_v7, 0.0  ;;  %v763_v31 = vsel %vm683_vm0, %v654_v11, 0.0  ;;  %v575_v32 = vadd.f32 %v2732_v4, %v483_v16  ;;  %v576_v33 = vadd.f32 %v2732_v4, %v485_v17 }
 0x118   : > { %v1995_v37 = vpop.eup %1994  ;;  %v754_v38 = vrot.slane %v753_v15, 2  ;;  %v762_v39 = vadd.f32 %v761_v29, %v760_v0  ;;  %2004 = vpow2.f32 %v1086_v23  ;;  %v1072_v40 = vmul.f32 1.442695, %v1004_v14 }
 0x119   : > { %v655_v41 = vmul.f32 %v2765_v20, %v575_v32  ;;  %v656_v42 = vmul.f32 %v2770_v22, %v576_v33  ;;  %v1193_v43 = vadd.f32 1.0, %v1995_v37  ;;  %v949_v47 = vadd.f32 %v3029_v26, %v869_v24 }
 0x11a   : > { %v1997_v49 = vpop.eup %1996  ;;  %v755_v50 = vadd.f32 %v754_v38, %v753_v15  ;;  %v764_v51 = vadd.f32 %v763_v31, %v762_v39  ;;  %v487_v54 = vpop.xlane.xlu0 %486  ;;  %2006 = vpow2.f32 %v1072_v40  ;;  %v941_v2 = vadd.f32 %v3040_v35, %v861_v28 }
 0x11b   : > { %v489_v63 = vpop.xlane.xlu1 %488  ;;  %v1999_v7 = vpop.eup %1998  ;;  %v765_v0 = vsel %vm683_vm0, %v655_v41, 0.0  ;;  %v767_v11 = vsel %vm683_vm0, %v656_v42, 0.0  ;;  %v577_v14 = vadd.f32 %v2732_v4, %v487_v54  ;;  %2008 = vrcp.f32 %v1193_v43 }
 0x11c   : > { %v578_v16 = vadd.f32 %v2732_v4, %v489_v63  ;;  %v756_v17 = vrot.slane %v755_v50, 1  ;;  %v766_v23 = vadd.f32 %v765_v0, %v764_v51  ;;  %v1192_v24 = vadd.f32 1.0, %v1997_v49 }
 0x11d   : > { %v657_v15 = vmul.f32 %v2783_v34, %v577_v14  ;;  %v1194_v31 = vadd.f32 1.0, %v1999_v7  ;;  %v1013_v32 = vsub.f32 0.0, %v949_v47  ;;  %v1005_v40 = vsub.f32 0.0, %v941_v2 }
 0x11e   : > { %v658_v29 = vmul.f32 %v2788_v36, %v578_v16  ;;  %v2001_v28 = vpop.eup %2000  ;;  %v757_v33 = vadd.f32 %v756_v17, %v755_v50  ;;  %v768_v37 = vadd.f32 %v767_v11, %v766_v23  ;;  %v491_v38 = vpop.xlane.xlu0 %490  ;;  %2010 = vrcp.f32 %v1192_v24  ;;  %v3062_v11 = vld [vmem:[%s3641_s3 + $0x78] sm:$0xff] }
 0x11f   : > { %v493_v39 = vpop.xlane.xlu1 %492  ;;  %v2003_v41 = vpop.eup %2002  ;;  %v769_v42 = vsel %vm683_vm0, %v657_v15, 0.0  ;;  %v579_v43 = vadd.f32 %v2732_v4, %v491_v38  ;;  %2012 = vrcp.f32 %v1194_v31  ;;  %v1201_v47 = vadd.f32 1.0, %v2001_v28  ;;  %3657 = vst [vmem:[#allocation9_spill] sm:$0xff] %v3062_v11 }
 0x120   : > { %v771_v51 = vsel %vm683_vm0, %v658_v29, 0.0  ;;  %v580_v49 = vadd.f32 %v2732_v4, %v493_v39  ;;  %v833_v54 = vadd.f32 %v757_v33, %v2732_v4  ;;  %v770_v63 = vadd.f32 %v769_v42, %v768_v37  ;;  %v3073_v33 = vld [vmem:[%s3642_s4 + $0x78] sm:$0xff]  ;;  %v3078_v37 = vld [vmem:[%s3641_s3 + $0x30] sm:$0xff] }
 0x121   : > { %v659_v50 = vmul.f32 %v2799_v46, %v579_v43  ;;  %v1195_v0 = vadd.f32 1.0, %v2003_v41  ;;  %v1090_v2 = vmul.f32 1.442695, %v1013_v32  ;;  %2014 = vrcp.f32 %v1201_v47  ;;  %3658 = vst [vmem:[#allocation10_spill] sm:$0xff] %v3073_v33 }
 0x122   : > { %v660_v7 = vmul.f32 %v2804_v48, %v580_v49  ;;  %v2005_v14 = vpop.eup %2004  ;;  %v3064_v16 = vmax.f32 %v833_v54, 0.0  ;;  %v772_v17 = vadd.f32 %v771_v51, %v770_v63  ;;  %v495_v23 = vpop.xlane.xlu0 %494  ;;  %v1074_v15 = vmul.f32 1.442695, %v1005_v40  ;;  %v3087_v49 = vld [vmem:[%s3642_s4 + $0x30] sm:$0xff] }
 0x123   : > { %v497_v24 = vpop.xlane.xlu1 %496  ;;  %v773_v29 = vsel %vm683_vm0, %v659_v50, 0.0  ;;  %v581_v28 = vadd.f32 %v2732_v4, %v495_v23  ;;  %2016 = vrcp.f32 %v1195_v0  ;;  %v1203_v40 = vadd.f32 1.0, %v2005_v14  ;;  %v3095_v14 = vld [vmem:[%s3641_s3 + $0x38] sm:$0xff] }
 0x124   : > { %v775_v31 = vsel %vm683_vm0, %v660_v7, 0.0  ;;  %v582_v32 = vadd.f32 %v2732_v4, %v497_v24  ;;  %v2007_v38 = vpop.eup %2006  ;;  %v774_v39 = vadd.f32 %v773_v29, %v772_v17  ;;  %v871_v41 = vmul.f32 %v3062_v11, %v2910_v62  ;;  %v3104_v29 = vld [vmem:[%s3641_s3 + $0x40] sm:$0xff] }
 0x125   : > { %v661_v42 = vmul.f32 %v2815_v58, %v581_v28  ;;  %v1196_v43 = vadd.f32 1.0, %v2007_v38  ;;  %2018 = vpow2.f32 %v1090_v2  ;;  %v2009_v54 = vpop.eup %2008  ;;  %v862_v0 = vmul.f32 %v3078_v37, %v2910_v62  ;;  %3659 = vst [vmem:[#allocation11_spill] sm:$0xff] %v3104_v29 }
 0x126   : > { %v662_v51 = vmul.f32 %v2820_v60, %v582_v32  ;;  %v776_v63 = vadd.f32 %v775_v31, %v774_v39  ;;  %v499_v47 = vpop.xlane.xlu0 %498  ;;  %2020 = vrcp.f32 %v1203_v40  ;;  %v951_v7 = vadd.f32 %v3073_v33, %v871_v41  ;;  %1391 = vperm.xlu1 %1993, %v2009_v54  }
 0x127   : > { %v501_v50 = vpop.xlane.xlu1 %500  ;;  %v777_v2 = vsel %vm683_vm0, %v661_v42, 0.0  ;;  %v583_v23 = vadd.f32 %v2732_v4, %v499_v47  ;;  %2022 = vrcp.f32 %v1196_v43  ;;  %v942_v38 = vadd.f32 %v3087_v49, %v862_v0  ;;  %v3114_v42 = vld [vmem:[%s3642_s4 + $0x38] sm:$0xff] }
 0x128   : > { %v779_v17 = vsel %vm683_vm0, %v662_v51, 0.0  ;;  %v584_v24 = vadd.f32 %v2732_v4, %v501_v50  ;;  %v2011_v31 = vpop.eup %2010  ;;  %v778_v28 = vadd.f32 %v777_v2, %v776_v63  ;;  %v1015_v32 = vsub.f32 0.0, %v951_v7 }
 0x129   : > { %1386 = vperm.xlu0 %1992, %v2011_v31   ;;  %v663_v39 = vmul.f32 %v2831_v9, %v583_v23  ;;  %2024 = vpow2.f32 %v1074_v15  ;;  %v863_v41 = vmul.f32 %v3095_v14, %v2910_v62  ;;  %v2013_v51 = vpop.eup %2012  ;;  %v1006_v50 = vsub.f32 0.0, %v942_v38  ;;  %v3121_v15 = vld [vmem:[%s3642_s4 + $0x40] sm:$0xff] }
 0x12a   : > { %v664_v40 = vmul.f32 %v2836_v13, %v584_v24  ;;  %v780_v54 = vadd.f32 %v779_v17, %v778_v28  ;;  %v503_v43 = vpop.xlane.xlu0 %502  ;;  %v1094_v47 = vmul.f32 1.442695, %v1015_v32  ;;  %v864_v7 = vmul.f32 %v3104_v29, %v2910_v62  ;;  %1396 = vperm.xlu1 %1993, %v2013_v51  }
 0x12b   : > { %v505_v63 = vpop.xlane.xlu1 %504  ;;  %v781_v0 = vsel %vm683_vm0, %v663_v39, 0.0  ;;  %v585_v23 = vadd.f32 %v2732_v4, %v503_v43  ;;  %v2015_v24 = vpop.eup %2014  ;;  %v1076_v28 = vmul.f32 1.442695, %v1006_v50  ;;  %v943_v32 = vadd.f32 %v3114_v42, %v863_v41 }
 0x12c   : > { %v783_v2 = vsel %vm683_vm0, %v664_v40, 0.0  ;;  %v586_v17 = vadd.f32 %v2732_v4, %v505_v63  ;;  %v782_v31 = vadd.f32 %v781_v0, %v780_v54  ;;  %2026 = vpow2.f32 %v1094_v47  ;;  %v3134_v54 = vld [vmem:[%s3641_s3 + $0x50] sm:$0xff] }
 0x12d   : > { %1431 = vperm.xlu0 %1992, %v2015_v24   ;;  %v665_v38 = vmul.f32 %v2847_v25, %v585_v23  ;;  %v944_v33 = vadd.f32 %v3121_v15, %v864_v7  ;;  %v2017_v29 = vpop.eup %2016  ;;  %2028 = vpow2.f32 %v1076_v28  ;;  %v1007_v43 = vsub.f32 0.0, %v943_v32 }
 0x12e   : > { %v784_v39 = vadd.f32 %v783_v2, %v782_v31  ;;  %v666_v40 = vmul.f32 %v2852_v27, %v586_v17  ;;  %v507_v51 = vpop.xlane.xlu0 %506  ;;  %1401 = vperm.xlu1 %1993, %v2017_v29   ;;  %v873_v17 = vmul.f32 %v2898_v57, %v3064_v16  ;;  %v866_v28 = vmul.f32 %v3134_v54, %v2910_v62 }
 0x12f   : > { %v509_v11 = vpop.xlane.xlu1 %508  ;;  %v2019_v63 = vpop.eup %2018  ;;  %v785_v41 = vsel %vm683_vm0, %v665_v38, 0.0  ;;  %v587_v47 = vadd.f32 %v2732_v4, %v507_v51  ;;  %v1078_v2 = vmul.f32 1.442695, %v1007_v43  ;;  %v1008_v23 = vsub.f32 0.0, %v944_v33 }
 0x130   : > { %v588_v50 = vadd.f32 %v2732_v4, %v509_v11  ;;  %v2021_v7 = vpop.eup %2020  ;;  %v1205_v0 = vadd.f32 1.0, %v2019_v63  ;;  %v786_v32 = vadd.f32 %v785_v41, %v784_v39  ;;  %v787_v38 = vsel %vm683_vm0, %v666_v40, 0.0  ;;  %v3153_v39 = vld [vmem:[%s3642_s4 + $0x50] sm:$0xff] }
 0x131   : > { %1441 = vperm.xlu0 %1992, %v2021_v7   ;;  %v667_v24 = vmul.f32 %v2738_v8, %v587_v47  ;;  %v2023_v29 = vpop.eup %2022  ;;  %v1080_v43 = vmul.f32 1.442695, %v1008_v23  ;;  %v953_v47 = vadd.f32 %v2917_v3, %v873_v17  ;;  %v875_v23 = vmul.f32 %v2943_v19, %v3064_v16 }
 0x132   : > { %v668_v31 = vmul.f32 %v2749_v10, %v588_v50  ;;  %2030 = vrcp.f32 %v1205_v0  ;;  %v511_v11 = vpop.xlane.xlu0 %510  ;;  %1406 = vperm.xlu1 %1993, %v2023_v29  }
 0x133   : > { %v513_v51 = vpop.xlane.xlu1 %512  ;;  %v2025_v33 = vpop.eup %2024  ;;  %v795_v63 = vsel %vm683_vm0, %v667_v24, 0.0  ;;  %v589_v8 = vadd.f32 %v2732_v4, %v511_v11  ;;  %2032 = vpow2.f32 %v1078_v2 }
 0x134   : > { %v796_v7 = vsel %vm683_vm0, %v668_v31, 0.0  ;;  %v590_v10 = vadd.f32 %v2732_v4, %v513_v51  ;;  %v1197_v41 = vadd.f32 1.0, %v2025_v33  ;;  %2034 = vpow2.f32 %v1080_v43 }
 0x135   : > { %v797_v40 = vadd.f32 %v796_v7, %v795_v63  ;;  %v669_v50 = vmul.f32 %v2744_v1, %v589_v8  ;;  %v788_v31 = vadd.f32 %v787_v38, %v786_v32  ;;  %v946_v51 = vadd.f32 %v3153_v39, %v866_v28 }
 0x136   : > { %v670_v0 = vmul.f32 %v2754_v12, %v590_v10  ;;  %v2027_v24 = vpop.eup %2026  ;;  %2036 = vrcp.f32 %v1197_v41  ;;  %v515_v29 = vpop.xlane.xlu0 %514  ;;  %v1017_v7 = vsub.f32 0.0, %v953_v47  ;;  %v955_v8 = vadd.f32 %v2966_v45, %v875_v23 }
 0x137   : > { %v517_v11 = vpop.xlane.xlu1 %516  ;;  %v798_v33 = vsel %vm683_vm0, %v669_v50, 0.0  ;;  %v1207_v17 = vadd.f32 1.0, %v2027_v24  ;;  %v591_v1 = vadd.f32 %v2732_v4, %v515_v29  ;;  %v2029_v63 = vpop.eup %2028  ;;  %v789_v10 = vrot.slane %v788_v31, 4 }
 0x138   : > { %v800_v2 = vsel %vm683_vm0, %v670_v0, 0.0  ;;  %v799_v12 = vadd.f32 %v798_v33, %v797_v40  ;;  %v592_v43 = vadd.f32 %v2732_v4, %v517_v11  ;;  %v1198_v38 = vadd.f32 1.0, %v2029_v63 }
 0x139   : > { %2038 = vrcp.f32 %v1207_v17  ;;  %v671_v32 = vmul.f32 %v2765_v20, %v591_v1  ;;  %v1010_v24 = vsub.f32 0.0, %v946_v51  ;;  %v1098_v17 = vmul.f32 1.442695, %v1017_v7 }
 0x13a   : > { %v801_v28 = vadd.f32 %v800_v2, %v799_v12  ;;  %v672_v41 = vmul.f32 %v2770_v22, %v592_v43  ;;  %v519_v50 = vpop.xlane.xlu0 %518  ;;  %2040 = vrcp.f32 %v1198_v38  ;;  %v1019_v2 = vsub.f32 0.0, %v955_v8 }
 0x13b   : > { %v521_v0 = vpop.xlane.xlu1 %520  ;;  %v802_v29 = vsel %vm683_vm0, %v671_v32, 0.0  ;;  %v593_v40 = vadd.f32 %v2732_v4, %v519_v50  ;;  %v790_v51 = vadd.f32 %v789_v10, %v788_v31  ;;  %v1084_v32 = vmul.f32 1.442695, %v1010_v24 }
 0x13c   : > { %v594_v47 = vadd.f32 %v2732_v4, %v521_v0  ;;  %v2031_v11 = vpop.eup %2030  ;;  %v803_v33 = vadd.f32 %v802_v29, %v801_v28  ;;  %v804_v20 = vsel %vm683_vm0, %v672_v41, 0.0  ;;  %2042 = vpow2.f32 %v1098_v17  ;;  %v3185_v17 = vld [vmem:[%s3641_s3 + $0x60] sm:$0xff] }
 0x13d   : > { %1451 = vperm.xlu0 %1992, %v2031_v11   ;;  %v673_v23 = vmul.f32 %v2783_v34, %v593_v40  ;;  %v2033_v1 = vpop.eup %2032  ;;  %v1102_v8 = vmul.f32 1.442695, %v1019_v2 }
 0x13e   : > { %v674_v22 = vmul.f32 %v2788_v36, %v594_v47  ;;  %v805_v63 = vadd.f32 %v804_v20, %v803_v33  ;;  %v523_v12 = vpop.xlane.xlu0 %522  ;;  %v2035_v38 = vpop.eup %2034  ;;  %v1199_v0 = vadd.f32 1.0, %v2033_v1  ;;  %v791_v33 = vrot.slane %v790_v51, 2 }
 0x13f   : > { %v525_v43 = vpop.xlane.xlu1 %524  ;;  %v806_v50 = vsel %vm683_vm0, %v673_v23, 0.0  ;;  %v595_v7 = vadd.f32 %v2732_v4, %v523_v12  ;;  %v1200_v31 = vadd.f32 1.0, %v2035_v38  ;;  %v868_v1 = vmul.f32 %v3185_v17, %v2910_v62 }
 0x140   : > { %v808_v28 = vsel %vm683_vm0, %v674_v22, 0.0  ;;  %v2037_v41 = vpop.eup %2036  ;;  %v807_v29 = vadd.f32 %v806_v50, %v805_v63  ;;  %v596_v34 = vadd.f32 %v2732_v4, %v525_v43  ;;  %2044 = vrcp.f32 %v1199_v0 }
 0x141   : > { %1411 = vperm.xlu1 %1993, %v2037_v41   ;;  %v675_v36 = vmul.f32 %v2799_v46, %v595_v7  ;;  %2046 = vpow2.f32 %v1084_v32  ;;  %v792_v63 = vadd.f32 %v791_v33, %v790_v51  ;;  %v3195_v32 = vld [vmem:[%s3642_s4 + $0x60] sm:$0xff] }
 0x142   : > { %v809_v10 = vadd.f32 %v808_v28, %v807_v29  ;;  %v676_v24 = vmul.f32 %v2804_v48, %v596_v34  ;;  %v527_v40 = vpop.xlane.xlu0 %526  ;;  %2048 = vpow2.f32 %v1102_v8  ;;  %v948_v29 = vadd.f32 %v3195_v32, %v868_v1 }
 0x143   : > { %v529_v47 = vpop.xlane.xlu1 %528  ;;  %v2039_v11 = vpop.eup %2038  ;;  %v810_v20 = vsel %vm683_vm0, %v675_v36, 0.0  ;;  %v597_v23 = vadd.f32 %v2732_v4, %v527_v40  ;;  %2050 = vrcp.f32 %v1200_v31  ;;  %v793_v51 = vrot.slane %v792_v63, 1 }
 0x144   : > { %1461 = vperm.xlu0 %1992, %v2039_v11   ;;  %v2041_v46 = vpop.eup %2040  ;;  %v811_v22 = vadd.f32 %v810_v20, %v809_v10  ;;  %v812_v48 = vsel %vm683_vm0, %v676_v24, 0.0  ;;  %v598_v2 = vadd.f32 %v2732_v4, %v529_v47 }
 0x145   : > { %1416 = vperm.xlu1 %1993, %v2041_v46   ;;  %v677_v43 = vmul.f32 %v2815_v58, %v597_v23  ;;  %v794_v11 = vadd.f32 %v793_v51, %v792_v63 }
 0x146   : > { %v813_v12 = vadd.f32 %v812_v48, %v811_v22  ;;  %v678_v50 = vmul.f32 %v2820_v60, %v598_v2  ;;  %v2043_v28 = vpop.eup %2042  ;;  %v531_v7 = vpop.xlane.xlu0 %530  ;;  %v1012_v60 = vsub.f32 0.0, %v948_v29  ;;  %v877_v48 = vmul.f32 %v3020_v56, %v3064_v16 }
 0x147   : > { %v814_v38 = vsel %vm683_vm0, %v677_v43, 0.0  ;;  %v533_v41 = vpop.xlane.xlu1 %532  ;;  %v599_v31 = vadd.f32 %v2732_v4, %v531_v7  ;;  %v1209_v24 = vadd.f32 1.0, %v2043_v28  ;;  %v834_v63 = vadd.f32 %v794_v11, %v2732_v4 }
 0x148   : > { %v815_v0 = vadd.f32 %v814_v38, %v813_v12  ;;  %v816_v58 = vsel %vm683_vm0, %v678_v50, 0.0  ;;  %v600_v40 = vadd.f32 %v2732_v4, %v533_v41  ;;  %v1088_v38 = vmul.f32 1.442695, %v1012_v60  ;;  %v3215_v50 = vld [vmem:[%s3641_s3 + $0x70] sm:$0xff] }
 0x149   : > { %v679_v20 = vmul.f32 %v2831_v9, %v599_v31  ;;  %2052 = vrcp.f32 %v1209_v24  ;;  %v870_v29 = vmul.f32 %v3215_v50, %v2910_v62  ;;  %v3227_v51 = vmax.f32 %v834_v63, 0.0 }
 0x14a   : > { %v2045_v34 = vpop.eup %2044  ;;  %v817_v10 = vadd.f32 %v816_v58, %v815_v0  ;;  %v680_v23 = vmul.f32 %v2836_v13, %v600_v40  ;;  %v535_v46 = vpop.xlane.xlu0 %534  ;;  %v957_v0 = vadd.f32 %v3040_v35, %v877_v48 }
 0x14b   : > { %v2047_v36 = vpop.eup %2046  ;;  %1421 = vperm.xlu1 %1993, %v2045_v34   ;;  %v537_v22 = vpop.xlane.xlu1 %536  ;;  %v818_v2 = vsel %vm683_vm0, %v679_v20, 0.0  ;;  %v601_v9 = vadd.f32 %v2732_v4, %v535_v46  ;;  %v3225_v34 = vld [vmem:[%s3642_s4 + $0x70] sm:$0xff] }
 0x14c   : > { %v2049_v8 = vpop.eup %2048  ;;  %v1202_v33 = vadd.f32 1.0, %v2047_v36  ;;  %v819_v12 = vadd.f32 %v818_v2, %v817_v10  ;;  %v820_v43 = vsel %vm683_vm0, %v680_v23, 0.0  ;;  %v602_v13 = vadd.f32 %v2732_v4, %v537_v22 }
 0x14d   : > { %v2051_v47 = vpop.eup %2050  ;;  %v1211_v1 = vadd.f32 1.0, %v2049_v8  ;;  %v681_v7 = vmul.f32 %v2847_v25, %v601_v9  ;;  %v1021_v31 = vsub.f32 0.0, %v957_v0  ;;  %v950_v25 = vadd.f32 %v3225_v34, %v870_v29 }
 0x14e   : > { %2054 = vrcp.f32 %v1202_v33  ;;  %v821_v28 = vadd.f32 %v820_v43, %v819_v12  ;;  %v682_v41 = vmul.f32 %v2852_v27, %v602_v13  ;;  %v902_v27 = vmul.f32 %v3215_v50, %v3227_v51 }
 0x14f   : > { %1426 = vperm.xlu1 %1993, %v2051_v47   ;;  %2056 = vrcp.f32 %v1211_v1  ;;  %v822_v36 = vsel %vm683_vm0, %v681_v7, 0.0  ;;  %v1106_v62 = vmul.f32 1.442695, %v1021_v31  ;;  %v1014_v24 = vsub.f32 0.0, %v950_v25 }
 0x150   : > { %2058 = vpow2.f32 %v1088_v38  ;;  %v824_v58 = vsel %vm683_vm0, %v682_v41, 0.0  ;;  %v823_v8 = vadd.f32 %v822_v36, %v821_v28  ;;  %v3235_v40 = vadd.f32 %v3225_v34, %v902_v27 }
 0x151   : > { %v899_v33 = vmul.f32 %v2975_v52, %v3227_v51  ;;  %v1092_v20 = vmul.f32 1.442695, %v1014_v24  ;;  %v879_v23 = vmul.f32 %v3095_v14, %v3064_v16  ;;  %v872_v22 = vmul.f32 %v2903_v59, %v3064_v16 }
 0x152   : > { %v825_v10 = vadd.f32 %v824_v58, %v823_v8  ;;  %2060 = vpow2.f32 %v1106_v62  ;;  %v881_v38 = vmul.f32 %v2938_v18, %v3064_v16  ;;  %v874_v59 = vmul.f32 %v2908_v61, %v3064_v16 }
 0x153   : > { %v2053_v60 = vpop.eup %2052  ;;  %v959_v2 = vadd.f32 %v3114_v42, %v879_v23  ;;  %2062 = vpow2.f32 %v1092_v20  ;;  %v952_v43 = vadd.f32 %v2922_v5, %v872_v22  ;;  %v979_v63 = vadd.f32 %v2991_v21, %v899_v33 }
 0x154   : > { %v826_v47 = vrot.slane %v825_v10, 4  ;;  %1471 = vperm.xlu0 %1992, %v2053_v60   ;;  %v884_v28 = vmul.f32 %v3185_v17, %v3064_v16  ;;  %v961_v5 = vadd.f32 %v2961_v44, %v881_v38  ;;  %v954_v18 = vadd.f32 %v2927_v6, %v874_v59 }
 0x155   : > { %v1023_v13 = vsub.f32 0.0, %v959_v2  ;;  %v1016_v7 = vsub.f32 0.0, %v952_v43  ;;  %v1043_v58 = vsub.f32 0.0, %v979_v63  ;;  %v883_v8 = vmul.f32 %v2975_v52, %v3064_v16  ;;  %v3660_v63 = vld [vmem:[#allocation9_spill] sm:$0xff] }
 0x156   : > { %v827_v46 = vadd.f32 %v826_v47, %v825_v10  ;;  %v1025_v31 = vsub.f32 0.0, %v961_v5  ;;  %v876_v61 = vmul.f32 %v2980_v53, %v3064_v16  ;;  %v964_v25 = vadd.f32 %v3195_v32, %v884_v28  ;;  %v3662_v5 = vld [vmem:[#allocation10_spill] sm:$0xff] }
 0x157   : > { %v1110_v41 = vmul.f32 1.442695, %v1023_v13  ;;  %v1096_v36 = vmul.f32 1.442695, %v1016_v7  ;;  %v1018_v10 = vsub.f32 0.0, %v954_v18  ;;  %v885_v62 = vmul.f32 %v3015_v55, %v3064_v16 }
 0x158   : > { %v2055_v11 = vpop.eup %2054  ;;  %v828_v12 = vrot.slane %v827_v46, 2  ;;  %v1114_v44 = vmul.f32 1.442695, %v1025_v31  ;;  %v963_v24 = vadd.f32 %v2991_v21, %v883_v8  ;;  %v956_v6 = vadd.f32 %v3002_v30, %v876_v61 }
 0x159   : > { %1436 = vperm.xlu1 %1993, %v2055_v11   ;;  %v2057_v48 = vpop.eup %2056  ;;  %v1100_v52 = vmul.f32 1.442695, %v1018_v10  ;;  %v965_v47 = vadd.f32 %v3029_v26, %v885_v62  ;;  %v878_v23 = vmul.f32 %v3078_v37, %v3064_v16  ;;  %v1028_v2 = vsub.f32 0.0, %v964_v25 }
 0x15a   : > { %v2059_v1 = vpop.eup %2058  ;;  %1481 = vperm.xlu0 %1992, %v2057_v48   ;;  %v829_v0 = vadd.f32 %v828_v12, %v827_v46  ;;  %v1027_v33 = vsub.f32 0.0, %v963_v24  ;;  %v1020_v20 = vsub.f32 0.0, %v956_v6  ;;  %v1150_v18 = vmul.f32 1.442695, %v1043_v58 }
 0x15b   : > { %v1204_v9 = vadd.f32 1.0, %v2059_v1  ;;  %v1029_v21 = vsub.f32 0.0, %v965_v47  ;;  %v958_v12 = vadd.f32 %v3087_v49, %v878_v23  ;;  %v882_v61 = vmul.f32 %v3134_v54, %v3064_v16 }
 0x15c   : > { %v830_v29 = vrot.slane %v829_v0, 1  ;;  %v2061_v11 = vpop.eup %2060  ;;  %v1104_v38 = vmul.f32 1.442695, %v1020_v20  ;;  %v1120_v25 = vmul.f32 1.442695, %v1028_v2 }
 0x15d   : > { %2064 = vrcp.f32 %v1204_v9  ;;  %v2063_v46 = vpop.eup %2062  ;;  %v1213_v48 = vadd.f32 1.0, %v2061_v11  ;;  %v887_v9 = vmul.f32 %v3660_v63, %v3064_v16  ;;  %v1122_v59 = vmul.f32 1.442695, %v1029_v21 }
 0x15e   : > { %v831_v27 = vadd.f32 %v830_v29, %v829_v0  ;;  %2066 = vpow2.f32 %v1110_v41  ;;  %v1206_v1 = vadd.f32 1.0, %v2063_v46  ;;  %v1022_v28 = vsub.f32 0.0, %v958_v12  ;;  %v3661_v0 = vld [vmem:[#allocation11_spill] sm:$0xff] }
 0x15f   : > { %2068 = vpow2.f32 %v1096_v36  ;;  %v880_v7 = vmul.f32 %v3661_v0, %v3064_v16  ;;  %v967_v29 = vadd.f32 %v3662_v5, %v887_v9  ;;  %v889_v36 = vmul.f32 %v2898_v57, %v3227_v51 }
 0x160   : > { %v835_v60 = vadd.f32 %v831_v27, %v2732_v4  ;;  %2070 = vpow2.f32 %v1114_v44  ;;  %v1118_v4 = vmul.f32 1.442695, %v1027_v33  ;;  %v1108_v31 = vmul.f32 1.442695, %v1022_v28 }
 0x161   : > { %2072 = vpow2.f32 %v1100_v52  ;;  %v960_v8 = vadd.f32 %v3121_v15, %v880_v7  ;;  %v969_v27 = vadd.f32 %v2917_v3, %v889_v36  ;;  %v1031_v62 = vsub.f32 0.0, %v967_v29 }
 0x162   : > { %v3267_v22 = vmax.f32 %v835_v60, 0.0  ;;  %2074 = vrcp.f32 %v1213_v48  ;;  %v886_v57 = vmul.f32 %v3215_v50, %v3064_v16  ;;  %v962_v52 = vadd.f32 %v3153_v39, %v882_v61 }
 0x163   : > { %2076 = vrcp.f32 %v1206_v1  ;;  %v1024_v6 = vsub.f32 0.0, %v960_v8  ;;  %v1033_v33 = vsub.f32 0.0, %v969_v27  ;;  %v891_v3 = vmul.f32 %v2943_v19, %v3227_v51  ;;  %v3324_v27 = vld [vmem:[%s3641_s3 + $0x10] sm:$0xff] }
 0x164   : > { %v918_v43 = vmul.f32 %v3215_v50, %v3267_v22  ;;  %2078 = vpow2.f32 %v1118_v4  ;;  %v1126_v23 = vmul.f32 1.442695, %v1031_v62  ;;  %v893_v46 = vmul.f32 %v3020_v56, %v3227_v51 }
 0x165   : > { %2080 = vpow2.f32 %v1104_v38  ;;  %v1112_v21 = vmul.f32 1.442695, %v1024_v6  ;;  %v971_v16 = vadd.f32 %v2966_v45, %v891_v3  ;;  %v895_v50 = vmul.f32 %v3095_v14, %v3227_v51 }
 0x166   : > { %v3277_v41 = vadd.f32 %v3225_v34, %v918_v43  ;;  %2082 = vpow2.f32 %v1122_v59  ;;  %v966_v1 = vadd.f32 %v3225_v34, %v886_v57  ;;  %v1026_v19 = vsub.f32 0.0, %v962_v52  ;;  %v3301_v43 = vld [vmem:[%s3641_s3] sm:$0xff]  ;;  %v3311_v59 = vld [vmem:[%s3641_s3 + $0x48] sm:$0xff] }
 0x167   : > { %v2065_v13 = vpop.eup %2064  ;;  %2084 = vpow2.f32 %v1108_v31  ;;  %v973_v4 = vadd.f32 %v3040_v35, %v893_v46  ;;  %v1130_v56 = vmul.f32 1.442695, %v1033_v33  ;;  %v888_v45 = vmul.f32 %v3301_v43, %v3227_v51  ;;  %v3346_v46 = vld [vmem:[%s3642_s4 + $0x10] sm:$0xff] }
 0x168   : > { %1446 = vperm.xlu1 %1993, %v2065_v13   ;;  %v2067_v10 = vpop.eup %2066  ;;  %2086 = vpow2.f32 %v1150_v18  ;;  %v975_v34 = vadd.f32 %v3114_v42, %v895_v50  ;;  %v892_v35 = vmul.f32 %v2980_v53, %v3227_v51  ;;  %v1035_v13 = vsub.f32 0.0, %v971_v16  ;;  %v3318_v53 = vld [vmem:[%s3642_s4] sm:$0xff] }
 0x169   : > { %v2069_v44 = vpop.eup %2068  ;;  %v1215_v24 = vadd.f32 1.0, %v2067_v10  ;;  %2088 = vpow2.f32 %v1120_v25  ;;  %v897_v28 = vmul.f32 %v3311_v59, %v3227_v51  ;;  %v1030_v29 = vsub.f32 0.0, %v966_v1 }
 0x16a   : > { %v2071_v60 = vpop.eup %2070  ;;  %v1208_v58 = vadd.f32 1.0, %v2069_v44  ;;  %v1116_v18 = vmul.f32 1.442695, %v1026_v19  ;;  %v1037_v31 = vsub.f32 0.0, %v973_v4  ;;  %v968_v25 = vadd.f32 %v3318_v53, %v888_v45 }
 0x16b   : > { %v2073_v47 = vpop.eup %2072  ;;  %v1217_v11 = vadd.f32 1.0, %v2071_v60  ;;  %2090 = vrcp.f32 %v1215_v24  ;;  %v890_v10 = vmul.f32 %v3324_v27, %v3227_v51  ;;  %v1039_v24 = vsub.f32 0.0, %v975_v34 }
 0x16c   : > { %v1210_v20 = vadd.f32 1.0, %v2073_v47  ;;  %v2075_v48 = vpop.eup %2074  ;;  %2092 = vrcp.f32 %v1208_v58  ;;  %v901_v60 = vmul.f32 %v3015_v55, %v3227_v51  ;;  %v1134_v57 = vmul.f32 1.442695, %v1035_v13  ;;  %v3337_v58 = vld [vmem:[%s3642_s4 + $0x48] sm:$0xff] }
 0x16d   : > { %v2077_v2 = vpop.eup %2076  ;;  %1491 = vperm.xlu0 %1992, %v2075_v48   ;;  %2094 = vrcp.f32 %v1217_v11  ;;  %v977_v52 = vadd.f32 %v3337_v58, %v897_v28  ;;  %v972_v11 = vadd.f32 %v3002_v30, %v892_v35  ;;  %v903_v33 = vmul.f32 %v3660_v63, %v3227_v51 }
 0x16e   : > { %v2079_v12 = vpop.eup %2078  ;;  %1456 = vperm.xlu1 %1993, %v2077_v2   ;;  %2096 = vrcp.f32 %v1210_v20  ;;  %v1138_v3 = vmul.f32 1.442695, %v1037_v31  ;;  %v1032_v55 = vsub.f32 0.0, %v968_v25  ;;  %v970_v48 = vadd.f32 %v3346_v46, %v890_v10  ;;  %v2256_v31 = vld [vmem:[%s3641_s3 + $0x8] sm:$0xff] }
 0x16f   : > { %v1219_v38 = vadd.f32 1.0, %v2079_v12  ;;  %2098 = vpow2.f32 %v1126_v23  ;;  %v2081_v9 = vpop.eup %2080  ;;  %v1124_v23 = vmul.f32 1.442695, %v1030_v29  ;;  %v894_v30 = vmul.f32 %v3078_v37, %v3227_v51 }
 0x170   : > { %2100 = vpow2.f32 %v1112_v21  ;;  %v2083_v7 = vpop.eup %2082  ;;  %v1212_v36 = vadd.f32 1.0, %v2081_v9  ;;  %v1142_v63 = vmul.f32 1.442695, %v1039_v24  ;;  %v981_v50 = vadd.f32 %v3029_v26, %v901_v60 }
 0x171   : > { %v2085_v8 = vpop.eup %2084  ;;  %v1221_v61 = vadd.f32 1.0, %v2083_v7  ;;  %2102 = vpow2.f32 %v1130_v56  ;;  %v1041_v2 = vsub.f32 0.0, %v977_v52  ;;  %v1036_v19 = vsub.f32 0.0, %v972_v11  ;;  %v2257_v11 = vld [vmem:[%s3642_s4 + $0x8] sm:$0xff] }
 0x172   : > { %v3328_v62 = vpop.eup %2086  ;;  %2104 = vrcp.f32 %v1219_v38  ;;  %v1214_v44 = vadd.f32 1.0, %v2085_v8  ;;  %v983_v4 = vadd.f32 %v3662_v5, %v903_v33  ;;  %v896_v12 = vmul.f32 %v3661_v0, %v3227_v51 }
 0x173   : > { %v3330_v6 = vpop.eup %2088  ;;  %2106 = vrcp.f32 %v1212_v36  ;;  %v1128_v45 = vmul.f32 1.442695, %v1032_v55  ;;  %v1034_v38 = vsub.f32 0.0, %v970_v48  ;;  %v974_v34 = vadd.f32 %v3087_v49, %v894_v30 }
 0x174   : > { %2108 = vrcp.f32 %v1221_v61  ;;  %v1045_v35 = vsub.f32 0.0, %v981_v50  ;;  %v898_v5 = vmul.f32 %v3134_v54, %v3227_v51  ;;  %v1146_v13 = vmul.f32 1.442695, %v1041_v2 }
 0x175   : > { %v2091_v47 = vpop.eup %2090  ;;  %2110 = vpow2.f32 %v1116_v18  ;;  %v1136_v28 = vmul.f32 1.442695, %v1036_v19  ;;  %v976_v7 = vadd.f32 %v3121_v15, %v896_v12  ;;  %v1047_v18 = vsub.f32 0.0, %v983_v4 }
 0x176   : > { %v2093_v20 = vpop.eup %2092  ;;  %1501 = vperm.xlu0 %1992, %v2091_v47   ;;  %2112 = vrcp.f32 %v1214_v44  ;;  %v1132_v49 = vmul.f32 1.442695, %v1034_v38  ;;  %v905_v8 = vmul.f32 %v2256_v31, %v3267_v22  ;;  %v1038_v61 = vsub.f32 0.0, %v974_v34  ;;  %v2260_v38 = vld [vmem:[%s3641_s3 + $0x28] sm:$0xff] }
 0x177   : > { %v2095_v21 = vpop.eup %2094  ;;  %1466 = vperm.xlu1 %1993, %v2093_v20   ;;  %2114 = vpow2.f32 %v1134_v57  ;;  %v1154_v10 = vmul.f32 1.442695, %v1045_v35  ;;  %v978_v15 = vadd.f32 %v3153_v39, %v898_v5  ;;  %v900_v44 = vmul.f32 %v3185_v17, %v3227_v51  ;;  %v2258_v39 = vld [vmem:[%s3641_s3 + $0x18] sm:$0xff] }
 0x178   : > { %v2097_v16 = vpop.eup %2096  ;;  %2116 = vpow2.f32 %v1138_v3  ;;  %v1040_v60 = vsub.f32 0.0, %v976_v7  ;;  %v1158_v47 = vmul.f32 1.442695, %v1047_v18  ;;  %v985_v33 = vadd.f32 %v2257_v11, %v905_v8 }
 0x179   : > { %v2099_v1 = vpop.eup %2098  ;;  %2118 = vpow2.f32 %v1124_v23  ;;  %v907_v51 = vmul.f32 %v2258_v39, %v3267_v22  ;;  %v1220_v20 = vadd.f32 1.0, %v3330_v6  ;;  %v1140_v48 = vmul.f32 1.442695, %v1038_v61  ;;  %v2259_v6 = vld [vmem:[%s3642_s4 + $0x18] sm:$0xff] }
 0x17a   : > { %v2101_v56 = vpop.eup %2100  ;;  %1511 = vperm.xlu0 %1992, %v2095_v21   ;;  %v1223_v37 = vadd.f32 1.0, %v2099_v1  ;;  %2120 = vpow2.f32 %v1142_v63  ;;  %v1042_v21 = vsub.f32 0.0, %v978_v15  ;;  %v980_v30 = vadd.f32 %v3195_v32, %v900_v44 }
 0x17b   : > { %1476 = vperm.xlu1 %1993, %v2097_v16   ;;  %v1216_v26 = vadd.f32 1.0, %v2101_v56  ;;  %v2103_v9 = vpop.eup %2102  ;;  %v1144_v2 = vmul.f32 1.442695, %v1040_v60  ;;  %v1049_v1 = vsub.f32 0.0, %v985_v33  ;;  %v987_v19 = vadd.f32 %v2259_v6, %v907_v51 }
 0x17c   : > { %2122 = vrcp.f32 %v1223_v37  ;;  %v2105_v0 = vpop.eup %2104  ;;  %v1225_v29 = vadd.f32 1.0, %v2103_v9  ;;  %v1148_v37 = vmul.f32 1.442695, %v1042_v21  ;;  %v909_v34 = vmul.f32 %v2260_v38, %v3267_v22 }
 0x17d   : > { %2124 = vrcp.f32 %v1216_v26  ;;  %v2107_v36 = vpop.eup %2106  ;;  %v1162_v5 = vmul.f32 1.442695, %v1049_v1  ;;  %v913_v44 = vmul.f32 %v3311_v59, %v3267_v22  ;;  %v1235_v60 = vadd.f32 1.0, %v3328_v62 }
 0x17e   : > { %1521 = vperm.xlu0 %1992, %v2105_v0   ;;  %2126 = vpow2.f32 %v1128_v45  ;;  %v2109_v54 = vpop.eup %2108  ;;  %v1044_v45 = vsub.f32 0.0, %v980_v30  ;;  %v906_v59 = vmul.f32 %v3324_v27, %v3267_v22  ;;  %v2263_v30 = vld [vmem:[%s3641_s3 + $0x20] sm:$0xff] }
 0x17f   : > { %1486 = vperm.xlu1 %1993, %v2107_v36   ;;  %2128 = vrcp.f32 %v1225_v29  ;;  %v2111_v25 = vpop.eup %2110  ;;  %v2261_v36 = vld [vmem:[%s3642_s4 + $0x28] sm:$0xff]  ;;  %v993_v51 = vadd.f32 %v3337_v58, %v913_v44 }
 0x180   : > { %2130 = vpow2.f32 %v1146_v13  ;;  %v2113_v24 = vpop.eup %2112  ;;  %v1218_v57 = vadd.f32 1.0, %v2111_v25  ;;  %v1051_v13 = vsub.f32 0.0, %v987_v19  ;;  %v1152_v29 = vmul.f32 1.442695, %v1044_v45  ;;  %v2264_v19 = vld [vmem:[%s3642_s4 + $0x58] sm:$0xff]  ;;  %v2266_v45 = vld [vmem:[%s3641_s3 + $0x30] sm:$0xff] }
 0x181   : > { %2132 = vpow2.f32 %v1136_v28  ;;  %v2115_v52 = vpop.eup %2114  ;;  %v989_v18 = vadd.f32 %v2261_v36, %v909_v34  ;;  %v904_v25 = vmul.f32 %v3301_v43, %v3267_v22  ;;  %v1046_v43 = vsub.f32 0.0, %v3235_v40  ;;  %v2262_v40 = vld [vmem:[%s3641_s3 + $0x58] sm:$0xff]  ;;  %v2268_v36 = vld [vmem:[%s3642_s4 + $0x68] sm:$0xff] }
 0x182   : > { %1531 = vperm.xlu0 %1992, %v2109_v54   ;;  %2134 = vpow2.f32 %v1132_v49  ;;  %v2117_v3 = vpop.eup %2116  ;;  %v1227_v23 = vadd.f32 1.0, %v2115_v52  ;;  %v911_v49 = vmul.f32 %v3095_v14, %v3267_v22  ;;  %v1166_v61 = vmul.f32 1.442695, %v1051_v13 }
 0x183   : > { %1496 = vperm.xlu1 %1993, %v2113_v24   ;;  %2136 = vrcp.f32 %v1218_v57  ;;  %v2119_v55 = vpop.eup %2118  ;;  %v1229_v16 = vadd.f32 1.0, %v2117_v3  ;;  %v1053_v14 = vsub.f32 0.0, %v989_v18  ;;  %v984_v33 = vadd.f32 %v3318_v53, %v904_v25  ;;  %v2270_v25 = vld [vmem:[%s3642_s4 + $0x30] sm:$0xff] }
 0x184   : > { %2138 = vpow2.f32 %v1154_v10  ;;  %v2121_v63 = vpop.eup %2120  ;;  %v1222_v12 = vadd.f32 1.0, %v2119_v55  ;;  %v991_v57 = vadd.f32 %v3114_v42, %v911_v49  ;;  %v986_v58 = vadd.f32 %v3346_v46, %v906_v59  ;;  %v2265_v46 = vld [vmem:[%s3641_s3 + $0x68] sm:$0xff]  ;;  %v2269_v49 = vld [vmem:[%s3641_s3 + $0x78] sm:$0xff] }
 0x185   : > { %2140 = vrcp.f32 %v1227_v23  ;;  %v1231_v9 = vadd.f32 1.0, %v2121_v63  ;;  %v1170_v42 = vmul.f32 1.442695, %v1053_v14  ;;  %v915_v23 = vmul.f32 %v2262_v40, %v3267_v22 }
 0x186   : > { %v2123_v50 = vpop.eup %2122  ;;  %2142 = vpow2.f32 %v1158_v47  ;;  %v1048_v21 = vsub.f32 0.0, %v984_v33  ;;  %v908_v63 = vmul.f32 %v2263_v30, %v3267_v22  ;;  %v910_v38 = vmul.f32 %v2266_v45, %v3267_v22  ;;  %v2273_v33 = vld [vmem:[%s2593_s8] sm:$0xff]  ;;  %v2279_v45 = vld [vmem:[%s2593_s8 + $0x18] sm:$0xff] }
 0x187   : > { %v2125_v4 = vpop.eup %2124  ;;  %2144 = vrcp.f32 %v1220_v20  ;;  %1541 = vperm.xlu0 %1992, %v2123_v50   ;;  %v1055_v20 = vsub.f32 0.0, %v991_v57  ;;  %v2272_v57 = vld [vmem:[%s3641_s3 + $0x40] sm:$0xff] }
 0x188   : > { %v2127_v56 = vpop.eup %2126  ;;  %2146 = vpow2.f32 %v1140_v48  ;;  %1506 = vperm.xlu1 %1993, %v2125_v4   ;;  %v1156_v48 = vmul.f32 1.442695, %v1046_v43  ;;  %v995_v4 = vadd.f32 %v2264_v19, %v915_v23  ;;  %v2275_v23 = vld [vmem:[%s2593_s8 + $0x10] sm:$0xff] }
 0x189   : > { %v2129_v26 = vpop.eup %2128  ;;  %2148 = vrcp.f32 %v1229_v16  ;;  %v1224_v28 = vadd.f32 1.0, %v2127_v56  ;;  %v1174_v6 = vmul.f32 1.442695, %v1055_v20 }
 0x18a   : > { %v2131_v35 = vpop.eup %2130  ;;  %2150 = vpow2.f32 %v1144_v2  ;;  %v1057_v2 = vsub.f32 0.0, %v993_v51  ;;  %v2274_v51 = vld [vmem:[%s3642_s4 + $0x78] sm:$0xff] }
 0x18b   : > { %v2133_v0 = vpop.eup %2132  ;;  %2152 = vrcp.f32 %v1222_v12  ;;  %1551 = vperm.xlu0 %1992, %v2129_v26   ;;  %v1233_v8 = vadd.f32 1.0, %v2131_v35  ;;  %v917_v12 = vmul.f32 %v2265_v46, %v3267_v22  ;;  %v1160_v26 = vmul.f32 1.442695, %v1048_v21  ;;  %v2267_v35 = vld [vmem:[%s3642_s4 + $0x20] sm:$0xff] }
 0x18c   : > { %v2135_v7 = vpop.eup %2134  ;;  %2154 = vpow2.f32 %v1148_v37  ;;  %v1228_v47 = vadd.f32 1.0, %v2133_v0 }
 0x18d   : > { %v2137_v31 = vpop.eup %2136  ;;  %2156 = vrcp.f32 %v1231_v9  ;;  %v1226_v15 = vadd.f32 1.0, %v2135_v7  ;;  %v1050_v9 = vsub.f32 0.0, %v986_v58  ;;  %v997_v18 = vadd.f32 %v2268_v36, %v917_v12  ;;  %v2277_v58 = vld [vmem:[%s3641_s3 + $0x50] sm:$0xff] }
 0x18e   : > { %v2139_v54 = vpop.eup %2138  ;;  %1516 = vperm.xlu1 %1993, %v2137_v31   ;;  %2158 = vpow2.f32 %v1162_v5  ;;  %v988_v5 = vadd.f32 %v2267_v35, %v908_v63  ;;  %v919_v31 = vmul.f32 %v2269_v49, %v3267_v22  ;;  %v914_v30 = vmul.f32 %v2277_v58, %v3267_v22 }
 0x18f   : > { %v2141_v10 = vpop.eup %2140  ;;  %2160 = vrcp.f32 %v1224_v28  ;;  %v1237_v62 = vadd.f32 1.0, %v2139_v54  ;;  %v1178_v28 = vmul.f32 1.442695, %v1057_v2  ;;  %v2278_v2 = vld [vmem:[%s2593_s8 + $0x48] sm:$0xff] }
 0x190   : > { %v2143_v24 = vpop.eup %2142  ;;  %2162 = vpow2.f32 %v1152_v29  ;;  %1561 = vperm.xlu0 %1992, %v2141_v10   ;;  %v1059_v29 = vsub.f32 0.0, %v995_v4  ;;  %v990_v10 = vadd.f32 %v2270_v25, %v910_v38  ;;  %v1052_v14 = vsub.f32 0.0, %v988_v5 }
 0x191   : > { %v2145_v52 = vpop.eup %2144  ;;  %2164 = vrcp.f32 %v1233_v8  ;;  %v1239_v55 = vadd.f32 1.0, %v2143_v24  ;;  %v916_v5 = vmul.f32 %v3185_v17, %v3267_v22  ;;  %v2282_v17 = vld [vmem:[%s2593_s8 + $0x20] sm:$0xff] }
 0x192   : > { %v2147_v11 = vpop.eup %2146  ;;  %1526 = vperm.xlu1 %1993, %v2145_v52   ;;  %2166 = vpow2.f32 %v1166_v61  ;;  %v912_v52 = vmul.f32 %v2272_v57, %v3267_v22  ;;  %v1054_v40 = vsub.f32 0.0, %v990_v10 }
 0x193   : > { %v2149_v39 = vpop.eup %2148  ;;  %2168 = vrcp.f32 %v1226_v15  ;;  %v1230_v50 = vadd.f32 1.0, %v2147_v11  ;;  %v2271_v15 = vld [vmem:[%s2593_s8 + $0x8] sm:$0xff]  ;;  %v996_v10 = vadd.f32 %v3195_v32, %v916_v5 }
 0x194   : > { %v2151_v3 = vpop.eup %2150  ;;  %2170 = vrcp.f32 %v1235_v60  ;;  %1571 = vperm.xlu0 %1992, %v2149_v39   ;;  %v1164_v60 = vmul.f32 1.442695, %v1050_v9  ;;  %v1182_v39 = vmul.f32 1.442695, %v1059_v29  ;;  %v2280_v9 = vld [vmem:[%s3642_s4 + $0x50] sm:$0xff] }
 0x195   : > { %v2153_v53 = vpop.eup %2152  ;;  %2172 = vrcp.f32 %v1228_v47  ;;  %v1232_v37 = vadd.f32 1.0, %v2151_v3  ;;  %v999_v3 = vadd.f32 %v2274_v51, %v919_v31  ;;  %v994_v35 = vadd.f32 %v2280_v9, %v914_v30  ;;  %v2284_v30 = vld [vmem:[%s2593_s8 + $0x28] sm:$0xff] }
 0x196   : > { %v2155_v27 = vpop.eup %2154  ;;  %1536 = vperm.xlu1 %1993, %v2153_v53   ;;  %2174 = vrcp.f32 %v1237_v62  ;;  %v1061_v62 = vsub.f32 0.0, %v997_v18 }
 0x197   : > { %v2157_v16 = vpop.eup %2156  ;;  %2176 = vpow2.f32 %v1170_v42  ;;  %v1234_v61 = vadd.f32 1.0, %v2155_v27  ;;  %v1168_v27 = vmul.f32 1.442695, %v1052_v14  ;;  %v1063_v4 = vsub.f32 0.0, %v999_v3 }
 0x198   : > { %v2159_v1 = vpop.eup %2158  ;;  %1581 = vperm.xlu0 %1992, %v2157_v16   ;;  %2178 = vrcp.f32 %v1239_v55  ;;  %v1186_v19 = vmul.f32 1.442695, %v1061_v62  ;;  %v1058_v25 = vsub.f32 0.0, %v994_v35 }
 0x199   : > { %v2161_v56 = vpop.eup %2160  ;;  %2180 = vpow2.f32 %v1156_v48  ;;  %v1241_v0 = vadd.f32 1.0, %v2159_v1  ;;  %v2276_v48 = vld [vmem:[%s3642_s4 + $0x40] sm:$0xff]  ;;  %v1190_v18 = vmul.f32 1.442695, %v1063_v4 }
 0x19a   : > { %v3418_v34 = vpop.eup %2162  ;;  %1546 = vperm.xlu1 %1993, %v2161_v56   ;;  %2182 = vrcp.f32 %v1230_v50  ;;  %v992_v21 = vadd.f32 %v2276_v48, %v912_v52  ;;  %v1180_v52 = vmul.f32 1.442695, %v1058_v25 }
 0x19b   : > { %v2165_v13 = vpop.eup %2164  ;;  %2184 = vpow2.f32 %v1174_v6  ;;  %v1236_v50 = vadd.f32 1.0, %v3418_v34 }
 0x19c   : > { %v2167_v7 = vpop.eup %2166  ;;  %1591 = vperm.xlu0 %1992, %v2165_v13   ;;  %2186 = vrcp.f32 %v1232_v37  ;;  %v1172_v37 = vmul.f32 1.442695, %v1054_v40  ;;  %v1056_v34 = vsub.f32 0.0, %v992_v21 }
 0x19d   : > { %v2169_v54 = vpop.eup %2168  ;;  %2188 = vpow2.f32 %v1160_v26  ;;  %v1243_v43 = vadd.f32 1.0, %v2167_v7  ;;  %v2281_v7 = vld [vmem:[%s2593_s8 + $0x58] sm:$0xff] }
 0x19e   : > { %v2171_v24 = vpop.eup %2170  ;;  %1556 = vperm.xlu1 %1993, %v2169_v54   ;;  %2190 = vrcp.f32 %v1241_v0 }
 0x19f   : > { %v2173_v11 = vpop.eup %2172  ;;  %2192 = vpow2.f32 %v1178_v28 }
 0x1a0   : > { %1601 = vperm.xlu0 %1992, %v2171_v24   ;;  %v2175_v20 = vpop.eup %2174  ;;  %2194 = vrcp.f32 %v1234_v61  ;;  %v1176_v61 = vmul.f32 1.442695, %v1056_v34 }
 0x1a1   : > { %v2177_v55 = vpop.eup %2176  ;;  %2196 = vpow2.f32 %v1164_v60 }
 0x1a2   : > { %1566 = vperm.xlu1 %1993, %v2173_v11   ;;  %v2179_v16 = vpop.eup %2178  ;;  %2198 = vrcp.f32 %v1243_v43  ;;  %v1245_v56 = vadd.f32 1.0, %v2177_v55 }
 0x1a3   : > { %v2181_v6 = vpop.eup %2180  ;;  %2200 = vpow2.f32 %v1182_v39  ;;  %v1062_v39 = vsub.f32 0.0, %v3277_v41 }
 0x1a4   : > { %1611 = vperm.xlu0 %1992, %v2175_v20   ;;  %v2183_v12 = vpop.eup %2182  ;;  %2202 = vpow2.f32 %v1168_v27  ;;  %v1238_v28 = vadd.f32 1.0, %v2181_v6  ;;  %v2283_v20 = vld [vmem:[%s2593_s8 + $0x68] sm:$0xff]  ;;  %v2285_v6 = vld [vmem:[%s2593_s8 + $0x78] sm:$0xff] }
 0x1a5   : > { %v1392_v8 = vpop.permute.xlu1 %1391  ;;  %v2185_v26 = vpop.eup %2184  ;;  %2204 = vrcp.f32 %v1236_v50  ;;  %v1188_v48 = vmul.f32 1.442695, %v1062_v39 }
 0x1a6   : > { %v1705_v44 = vmul.f32 %v2271_v15, %v1392_v8  ;;  %1576 = vperm.xlu1 %1993, %v2183_v12   ;;  %v2187_v0 = vpop.eup %2186  ;;  %2206 = vpow2.f32 %v1186_v19  ;;  %v1247_v8 = vadd.f32 1.0, %v2185_v26 }
 0x1a7   : > { %v2189_v36 = vpop.eup %2188  ;;  %2208 = vrcp.f32 %v1245_v56 }
 0x1a8   : > { %v1387_v47 = vpop.permute.xlu0 %1386  ;;  %1769 = vst [vmem:[%s3440_s17 + $0x8] sm:$0xff] %v1705_v44  ;;  %1621 = vperm.xlu0 %1992, %v2179_v16   ;;  %v2191_v31 = vpop.eup %2190  ;;  %2210 = vpow2.f32 %v1172_v37  ;;  %v1240_v44 = vadd.f32 1.0, %v2189_v36  ;;  %v2286_v37 = vld [vmem:[%s2593_s8 + $0x30] sm:$0xff] }
 0x1a9   : > { %v1704_v59 = vmul.f32 %v2273_v33, %v1387_v47  ;;  %v1397_v42 = vpop.permute.xlu1 %1396  ;;  %v2193_v54 = vpop.eup %2192  ;;  %2212 = vrcp.f32 %v1238_v28  ;;  %v1060_v47 = vsub.f32 0.0, %v996_v10  ;;  %v2289_v10 = vld [vmem:[%s2593_s8 + $0x88] sm:$0xff] }
 0x1aa   : > { %v1706_v53 = vmul.f32 %v2275_v23, %v1397_v42  ;;  %1586 = vperm.xlu1 %1993, %v2187_v0   ;;  %v2195_v15 = vpop.eup %2194  ;;  %2214 = vpow2.f32 %v1190_v18  ;;  %v1249_v14 = vadd.f32 1.0, %v2193_v54 }
 0x1ab   : > { %1768 = vst [vmem:[%s3440_s17] sm:$0xff] %v1704_v59  ;;  %v2197_v24 = vpop.eup %2196  ;;  %2216 = vrcp.f32 %v1247_v8  ;;  %v1184_v62 = vmul.f32 1.442695, %v1060_v47 }
 0x1ac   : > { %v1432_v63 = vpop.permute.xlu0 %1431  ;;  %1770 = vst [vmem:[%s3440_s17 + $0x10] sm:$0xff] %v1706_v53  ;;  %1631 = vperm.xlu0 %1992, %v2191_v31   ;;  %v2199_v60 = vpop.eup %2198  ;;  %2218 = vpow2.f32 %v1176_v61  ;;  %v1242_v11 = vadd.f32 1.0, %v2197_v24  ;;  %v2290_v24 = vld [vmem:[%s2593_s8 + $0x50] sm:$0xff] }
 0x1ad   : > { %v1713_v1 = vmul.f32 %v2278_v2, %v1432_v63  ;;  %v1402_v46 = vpop.permute.xlu1 %1401  ;;  %v2201_v57 = vpop.eup %2200  ;;  %2220 = vrcp.f32 %v1240_v44 }
 0x1ae   : > { %v1707_v38 = vmul.f32 %v2279_v45, %v1402_v46  ;;  %1596 = vperm.xlu1 %1993, %v2195_v15   ;;  %v2203_v43 = vpop.eup %2202  ;;  %2222 = vrcp.f32 %v1249_v14  ;;  %v1251_v33 = vadd.f32 1.0, %v2201_v57 }
 0x1af   : > { %1777 = vst [vmem:[%s3440_s17 + $0x48] sm:$0xff] %v1713_v1  ;;  %v2205_v32 = vpop.eup %2204  ;;  %2224 = vpow2.f32 %v1180_v52  ;;  %v1244_v42 = vadd.f32 1.0, %v2203_v43  ;;  %v2291_v52 = vld [vmem:[%s2593_s8 + $0x98] sm:$0xff]  ;;  %v2292_v43 = vld [vmem:[%s2593_s8 + $0x60] sm:$0xff] }
 0x1b0   : > { %v1442_v13 = vpop.permute.xlu0 %1441  ;;  %1771 = vst [vmem:[%s3440_s17 + $0x18] sm:$0xff] %v1707_v38  ;;  %1641 = vperm.xlu0 %1992, %v2199_v60   ;;  %v2207_v59 = vpop.eup %2206  ;;  %2226 = vrcp.f32 %v1242_v11 }
 0x1b1   : > { %v1715_v29 = vmul.f32 %v2281_v7, %v1442_v13  ;;  %v1407_v49 = vpop.permute.xlu1 %1406  ;;  %v2209_v3 = vpop.eup %2208  ;;  %2228 = vrcp.f32 %v1251_v33  ;;  %v1253_v55 = vadd.f32 1.0, %v2207_v59  ;;  %v2287_v13 = vld [vmem:[%s2593_s8 + $0x38] sm:$0xff]  ;;  %v2293_v59 = vld [vmem:[%s2593_s8 + $0xa8] sm:$0xff] }
 0x1b2   : > { %v1708_v22 = vmul.f32 %v2282_v17, %v1407_v49  ;;  %1606 = vperm.xlu1 %1993, %v2205_v32   ;;  %v2211_v23 = vpop.eup %2210  ;;  %2230 = vpow2.f32 %v1184_v62  ;;  %v2288_v49 = vld [vmem:[%s2593_s8 + $0x40] sm:$0xff] }
 0x1b3   : > { %1779 = vst [vmem:[%s3440_s17 + $0x58] sm:$0xff] %v1715_v29  ;;  %v2213_v53 = vpop.eup %2212  ;;  %2232 = vrcp.f32 %v1244_v42  ;;  %v1246_v58 = vadd.f32 1.0, %v2211_v23 }
 0x1b4   : > { %1772 = vst [vmem:[%s3440_s17 + $0x20] sm:$0xff] %v1708_v22  ;;  %1651 = vperm.xlu0 %1992, %v2209_v3   ;;  %v2215_v27 = vpop.eup %2214  ;;  %2234 = vrcp.f32 %v1253_v55 }
 0x1b5   : > { %v2217_v21 = vpop.eup %2216  ;;  %v1255_v2 = vadd.f32 1.0, %v2215_v27  ;;  %2236 = vpow2.f32 %v1188_v48  ;;  %v2297_v48 = vld [vmem:[%s2593_s8 + $0xc8] sm:$0xff] }
 0x1b6   : > { %1616 = vperm.xlu1 %1993, %v2213_v53   ;;  %v2219_v16 = vpop.eup %2218  ;;  %2238 = vrcp.f32 %v1246_v58  ;;  %v2296_v53 = vld [vmem:[%s2593_s8 + $0x80] sm:$0xff]  ;;  %v2298_v58 = vld [vmem:[%s2593_s8 + $0x90] sm:$0xff] }
 0x1b7   : > { %v2221_v50 = vpop.eup %2220  ;;  %v1248_v46 = vadd.f32 1.0, %v2219_v16  ;;  %2240 = vrcp.f32 %v1255_v2  ;;  %v2299_v16 = vld [vmem:[%s2593_s8 + $0xd8] sm:$0xff] }
 0x1b8   : > { %1661 = vperm.xlu0 %1992, %v2217_v21   ;;  %v2223_v4 = vpop.eup %2222 }
 0x1b9   : > { %v2225_v56 = vpop.eup %2224  ;;  %2242 = vrcp.f32 %v1248_v46 }
 0x1ba   : > { %1626 = vperm.xlu1 %1993, %v2221_v50   ;;  %v2227_v38 = vpop.eup %2226  ;;  %v1250_v34 = vadd.f32 1.0, %v2225_v56  ;;  %v2302_v56 = vld [vmem:[%s2593_s8 + $0xb0] sm:$0xff] }
 0x1bb   : > { %v2229_v26 = vpop.eup %2228 }
 0x1bc   : > { %v1452_v51 = vpop.permute.xlu0 %1451  ;;  %1671 = vperm.xlu0 %1992, %v2223_v4   ;;  %v2231_v9 = vpop.eup %2230  ;;  %2244 = vrcp.f32 %v1250_v34  ;;  %v2301_v4 = vld [vmem:[%s2593_s8 + $0xe8] sm:$0xff] }
 0x1bd   : > { %v1717_v40 = vmul.f32 %v2283_v20, %v1452_v51  ;;  %v2233_v35 = vpop.eup %2232  ;;  %v1252_v7 = vadd.f32 1.0, %v2231_v9  ;;  %v2294_v51 = vld [vmem:[%s2593_s8 + $0x70] sm:$0xff]  ;;  %v2295_v20 = vld [vmem:[%s2593_s8 + $0xb8] sm:$0xff]  ;;  %v2304_v9 = vld [vmem:[%s2593_s8 + $0xc0] sm:$0xff] }
 0x1be   : > { %1636 = vperm.xlu1 %1993, %v2227_v38   ;;  %v2235_v28 = vpop.eup %2234  ;;  %v2303_v38 = vld [vmem:[%s2593_s8 + $0xf8] sm:$0xff] }
 0x1bf   : > { %1781 = vst [vmem:[%s3440_s17 + $0x68] sm:$0xff] %v1717_v40  ;;  %v2237_v29 = vpop.eup %2236  ;;  %2246 = vrcp.f32 %v1252_v7  ;;  %v2306_v7 = vld [vmem:[%s2593_s8 + $0xd0] sm:$0xff] }
 0x1c0   : > { %v1412_v41 = vpop.permute.xlu1 %1411  ;;  %1681 = vperm.xlu0 %1992, %v2229_v26   ;;  %v2239_v36 = vpop.eup %2238  ;;  %v1254_v17 = vadd.f32 1.0, %v2237_v29 }
 0x1c1   : > { %v1709_v63 = vmul.f32 %v2284_v30, %v1412_v41  ;;  %v2241_v8 = vpop.eup %2240 }
 0x1c2   : > { %1646 = vperm.xlu1 %1993, %v2233_v35   ;;  %2248 = vrcp.f32 %v1254_v17 }
 0x1c3   : > { %1773 = vst [vmem:[%s3440_s17 + $0x28] sm:$0xff] %v1709_v63  ;;  %v1462_v1 = vpop.permute.xlu0 %1461  ;;  %v2243_v22 = vpop.eup %2242 }
 0x1c4   : > { %v1719_v19 = vmul.f32 %v2285_v6, %v1462_v1  ;;  %v1417_v12 = vpop.permute.xlu1 %1416  ;;  %1691 = vperm.xlu0 %1992, %v2235_v28   ;;  %v2300_v1 = vld [vmem:[%s2593_s8 + $0xa0] sm:$0xff] }
 0x1c5   : > { %v1710_v45 = vmul.f32 %v2286_v37, %v1417_v12 }
 0x1c6   : > { %1783 = vst [vmem:[%s3440_s17 + $0x78] sm:$0xff] %v1719_v19  ;;  %1656 = vperm.xlu1 %1993, %v2239_v36   ;;  %v2245_v54 = vpop.eup %2244 }
 0x1c7   : > { %1774 = vst [vmem:[%s3440_s17 + $0x30] sm:$0xff] %v1710_v45 }
 0x1c8   : > { %1701 = vperm.xlu0 %1992, %v2241_v8   ;;  %v2308_v8 = vld [vmem:[%s2593_s8 + $0xe0] sm:$0xff] }
 0x1c9   : > { %v2247_v61 = vpop.eup %2246 }
 0x1ca   : > { %v1422_v5 = vpop.permute.xlu1 %1421  ;;  %1666 = vperm.xlu1 %1993, %v2243_v22  }
 0x1cb   : > { %v1711_v0 = vmul.f32 %v2287_v13, %v1422_v5  ;;  %v2305_v13 = vld [vmem:[%s2593_s8 + $0x108] sm:$0xff] }
 0x1cc   : > { %v2249_v14 = vpop.eup %2248 }
 0x1cd   : > { %1775 = vst [vmem:[%s3440_s17 + $0x38] sm:$0xff] %v1711_v0 }
 0x1ce   : > { %v1427_v18 = vpop.permute.xlu1 %1426  ;;  %1676 = vperm.xlu1 %1993, %v2245_v54   ;;  %v2309_v54 = vld [vmem:[%s2593_s8 + $0x128] sm:$0xff] }
 0x1cf   : > { %v1712_v31 = vmul.f32 %v2288_v49, %v1427_v18  ;;  %v2307_v18 = vld [vmem:[%s2593_s8 + $0x118] sm:$0xff] }
 0x1d1   : > { %1776 = vst [vmem:[%s3440_s17 + $0x40] sm:$0xff] %v1712_v31 }
 0x1d2   : > { %1686 = vperm.xlu1 %1993, %v2247_v61  }
 0x1d3   : > { %v1472_v25 = vpop.permute.xlu0 %1471 }
 0x1d4   : > { %v1721_v15 = vmul.f32 %v2289_v10, %v1472_v25  ;;  %v2310_v10 = vld [vmem:[%s2593_s8 + $0xf0] sm:$0xff] }
 0x1d6   : > { %1785 = vst [vmem:[%s3440_s17 + $0x88] sm:$0xff] %v1721_v15  ;;  %1696 = vperm.xlu1 %1993, %v2249_v14  }
 0x1d8   : > { %v1437_v44 = vpop.permute.xlu1 %1436 }
 0x1d9   : > { %v1714_v60 = vmul.f32 %v2290_v24, %v1437_v44  ;;  %v1482_v57 = vpop.permute.xlu0 %1481  ;;  %v2311_v24 = vld [vmem:[%s2593_s8 + $0x138] sm:$0xff] }
 0x1da   : > { %v1723_v47 = vmul.f32 %v2291_v52, %v1482_v57  ;;  %v2312_v57 = vld [vmem:[%s2593_s8 + $0x100] sm:$0xff] }
 0x1db   : > { %1778 = vst [vmem:[%s3440_s17 + $0x50] sm:$0xff] %v1714_v60 }
 0x1dc   : > { %1787 = vst [vmem:[%s3440_s17 + $0x98] sm:$0xff] %v1723_v47 }
 0x1e7   : > { %v1447_v11 = vpop.permute.xlu1 %1446 }
 0x1e8   : > { %v1716_v32 = vmul.f32 %v2292_v43, %v1447_v11  ;;  %v2313_v11 = vld [vmem:[%s2593_s8 + $0x148] sm:$0xff] }
 0x1ea   : > { %1780 = vst [vmem:[%s3440_s17 + $0x60] sm:$0xff] %v1716_v32 }
 0x1ec   : > { %v1492_v33 = vpop.permute.xlu0 %1491 }
 0x1ed   : > { %v1725_v39 = vmul.f32 %v2293_v59, %v1492_v33  ;;  %v1457_v62 = vpop.permute.xlu1 %1456  ;;  %v2314_v33 = vld [vmem:[%s2593_s8 + $0x110] sm:$0xff] }
 0x1ee   : > { %v1718_v3 = vmul.f32 %v2294_v51, %v1457_v62  ;;  %v2315_v62 = vld [vmem:[%s2593_s8 + $0x158] sm:$0xff] }
 0x1ef   : > { %1789 = vst [vmem:[%s3440_s17 + $0xa8] sm:$0xff] %v1725_v39 }
 0x1f0   : > { %1782 = vst [vmem:[%s3440_s17 + $0x70] sm:$0xff] %v1718_v3 }
 0x1f5   : > { %v1502_v42 = vpop.permute.xlu0 %1501 }
 0x1f6   : > { %v1727_v40 = vmul.f32 %v2295_v20, %v1502_v42  ;;  %v1467_v23 = vpop.permute.xlu1 %1466  ;;  %v2316_v42 = vld [vmem:[%s2593_s8 + $0x120] sm:$0xff] }
 0x1f7   : > { %v1720_v55 = vmul.f32 %v2296_v53, %v1467_v23  ;;  %v2317_v23 = vld [vmem:[%s2593_s8 + $0x168] sm:$0xff] }
 0x1f8   : > { %1791 = vst [vmem:[%s3440_s17 + $0xb8] sm:$0xff] %v1727_v40 }
 0x1f9   : > { %1784 = vst [vmem:[%s3440_s17 + $0x80] sm:$0xff] %v1720_v55  ;;  %v1512_v27 = vpop.permute.xlu0 %1511 }
 0x1fa   : > { %v1729_v41 = vmul.f32 %v2297_v48, %v1512_v27  ;;  %v1477_v21 = vpop.permute.xlu1 %1476  ;;  %v2318_v27 = vld [vmem:[%s2593_s8 + $0x130] sm:$0xff] }
 0x1fb   : > { %v1722_v30 = vmul.f32 %v2298_v58, %v1477_v21  ;;  %v2319_v21 = vld [vmem:[%s2593_s8 + $0x178] sm:$0xff] }
 0x1fc   : > { %1793 = vst [vmem:[%s3440_s17 + $0xc8] sm:$0xff] %v1729_v41 }
 0x1fd   : > { %1786 = vst [vmem:[%s3440_s17 + $0x90] sm:$0xff] %v1722_v30  ;;  %v1522_v63 = vpop.permute.xlu0 %1521 }
 0x1fe   : > { %v1731_v50 = vmul.f32 %v2299_v16, %v1522_v63  ;;  %v1487_v2 = vpop.permute.xlu1 %1486  ;;  %v2320_v63 = vld [vmem:[%s2593_s8 + $0x140] sm:$0xff] }
 0x1ff   : > { %v1724_v6 = vmul.f32 %v2300_v1, %v1487_v2  ;;  %v2321_v2 = vld [vmem:[%s2593_s8 + $0x188] sm:$0xff] }
 0x200   : > { %1795 = vst [vmem:[%s3440_s17 + $0xd8] sm:$0xff] %v1731_v50 }
 0x201   : > { %1788 = vst [vmem:[%s3440_s17 + $0xa0] sm:$0xff] %v1724_v6  ;;  %v1532_v19 = vpop.permute.xlu0 %1531 }
 0x202   : > { %v1733_v46 = vmul.f32 %v2301_v4, %v1532_v19  ;;  %v1497_v12 = vpop.permute.xlu1 %1496  ;;  %v2322_v19 = vld [vmem:[%s2593_s8 + $0x150] sm:$0xff] }
 0x203   : > { %v1726_v37 = vmul.f32 %v2302_v56, %v1497_v12  ;;  %v2323_v12 = vld [vmem:[%s2593_s8 + $0x198] sm:$0xff] }
 0x204   : > { %1797 = vst [vmem:[%s3440_s17 + $0xe8] sm:$0xff] %v1733_v46 }
 0x205   : > { %1790 = vst [vmem:[%s3440_s17 + $0xb0] sm:$0xff] %v1726_v37 }
 0x206   : > { %v1542_v45 = vpop.permute.xlu0 %1541 }
 0x207   : > { %v1735_v26 = vmul.f32 %v2303_v38, %v1542_v45  ;;  %v1507_v34 = vpop.permute.xlu1 %1506  ;;  %v2324_v45 = vld [vmem:[%s2593_s8 + $0x160] sm:$0xff] }
 0x208   : > { %v1728_v35 = vmul.f32 %v2304_v9, %v1507_v34  ;;  %v2325_v34 = vld [vmem:[%s2593_s8 + $0x1a8] sm:$0xff] }
 0x209   : > { %1799 = vst [vmem:[%s3440_s17 + $0xf8] sm:$0xff] %v1735_v26 }
 0x20a   : > { %1792 = vst [vmem:[%s3440_s17 + $0xc0] sm:$0xff] %v1728_v35  ;;  %v1552_v5 = vpop.permute.xlu0 %1551 }
 0x20b   : > { %v1737_v0 = vmul.f32 %v2305_v13, %v1552_v5  ;;  %v2326_v5 = vld [vmem:[%s2593_s8 + $0x170] sm:$0xff] }
 0x20d   : > { %1801 = vst [vmem:[%s3440_s17 + $0x108] sm:$0xff] %v1737_v0  ;;  %v1517_v28 = vpop.permute.xlu1 %1516 }
 0x20e   : > { %v1730_v29 = vmul.f32 %v2306_v7, %v1517_v28  ;;  %v2327_v28 = vld [vmem:[%s2593_s8 + $0x1b8] sm:$0xff] }
 0x20f   : > { %v1562_v36 = vpop.permute.xlu0 %1561 }
 0x210   : > { %1794 = vst [vmem:[%s3440_s17 + $0xd0] sm:$0xff] %v1730_v29  ;;  %v1739_v49 = vmul.f32 %v2307_v18, %v1562_v36  ;;  %v2328_v36 = vld [vmem:[%s2593_s8 + $0x180] sm:$0xff] }
 0x211   : > { %v1527_v31 = vpop.permute.xlu1 %1526 }
 0x212   : > { %1803 = vst [vmem:[%s3440_s17 + $0x118] sm:$0xff] %v1739_v49  ;;  %v1732_v17 = vmul.f32 %v2308_v8, %v1527_v31  ;;  %v2329_v31 = vld [vmem:[%s2593_s8 + $0x1c8] sm:$0xff] }
 0x213   : > { %v1572_v22 = vpop.permute.xlu0 %1571 }
 0x214   : > { %1796 = vst [vmem:[%s3440_s17 + $0xe0] sm:$0xff] %v1732_v17  ;;  %v1741_v61 = vmul.f32 %v2309_v54, %v1572_v22  ;;  %v2330_v22 = vld [vmem:[%s2593_s8 + $0x190] sm:$0xff] }
 0x215   : > { %v1537_v25 = vpop.permute.xlu1 %1536 }
 0x216   : > { %1805 = vst [vmem:[%s3440_s17 + $0x128] sm:$0xff] %v1741_v61  ;;  %v1734_v15 = vmul.f32 %v2310_v10, %v1537_v25  ;;  %v2331_v25 = vld [vmem:[%s2593_s8 + $0x1d8] sm:$0xff] }
 0x217   : > { %v1582_v44 = vpop.permute.xlu0 %1581 }
 0x218   : > { %1798 = vst [vmem:[%s3440_s17 + $0xf0] sm:$0xff] %v1734_v15  ;;  %v1743_v60 = vmul.f32 %v2311_v24, %v1582_v44  ;;  %v2332_v44 = vld [vmem:[%s2593_s8 + $0x1a0] sm:$0xff] }
 0x219   : > { %v1547_v14 = vpop.permute.xlu1 %1546 }
 0x21a   : > { %1807 = vst [vmem:[%s3440_s17 + $0x138] sm:$0xff] %v1743_v60  ;;  %v1736_v52 = vmul.f32 %v2312_v57, %v1547_v14  ;;  %v2333_v14 = vld [vmem:[%s2593_s8 + $0x1e8] sm:$0xff] }
 0x21b   : > { %v1592_v47 = vpop.permute.xlu0 %1591 }
 0x21c   : > { %1800 = vst [vmem:[%s3440_s17 + $0x100] sm:$0xff] %v1736_v52  ;;  %v1745_v43 = vmul.f32 %v2313_v11, %v1592_v47  ;;  %v2334_v47 = vld [vmem:[%s2593_s8 + $0x1b0] sm:$0xff] }
 0x21d   : > { %v1557_v32 = vpop.permute.xlu1 %1556 }
 0x21e   : > { %1809 = vst [vmem:[%s3440_s17 + $0x148] sm:$0xff] %v1745_v43  ;;  %v1738_v59 = vmul.f32 %v2314_v33, %v1557_v32  ;;  %v2335_v32 = vld [vmem:[%s2593_s8 + $0x1f8] sm:$0xff] }
 0x21f   : > { %v1602_v39 = vpop.permute.xlu0 %1601 }
 0x220   : > { %1802 = vst [vmem:[%s3440_s17 + $0x110] sm:$0xff] %v1738_v59  ;;  %v1747_v51 = vmul.f32 %v2315_v62, %v1602_v39  ;;  %v2336_v39 = vld [vmem:[%s2593_s8 + $0x1c0] sm:$0xff] }
 0x221   : > { %v1567_v3 = vpop.permute.xlu1 %1566 }
 0x222   : > { %1811 = vst [vmem:[%s3440_s17 + $0x158] sm:$0xff] %v1747_v51  ;;  %v1740_v20 = vmul.f32 %v2316_v42, %v1567_v3  ;;  %v2337_v3 = vld [vmem:[%s2593_s8 + $0x1d0] sm:$0xff] }
 0x223   : > { %v1612_v40 = vpop.permute.xlu0 %1611 }
 0x224   : > { %1804 = vst [vmem:[%s3440_s17 + $0x120] sm:$0xff] %v1740_v20  ;;  %v1749_v53 = vmul.f32 %v2317_v23, %v1612_v40  ;;  %v2338_v40 = vld [vmem:[%s2593_s8 + $0x1e0] sm:$0xff] }
 0x225   : > { %v1577_v55 = vpop.permute.xlu1 %1576 }
 0x226   : > { %1813 = vst [vmem:[%s3440_s17 + $0x168] sm:$0xff] %v1749_v53  ;;  %v1742_v48 = vmul.f32 %v2318_v27, %v1577_v55  ;;  %v2339_v55 = vld [vmem:[%s2593_s8 + $0x1f0] sm:$0xff] }
 0x227   : > { %v1622_v41 = vpop.permute.xlu0 %1621 }
 0x228   : > { %1806 = vst [vmem:[%s3440_s17 + $0x130] sm:$0xff] %v1742_v48  ;;  %v1751_v58 = vmul.f32 %v2319_v21, %v1622_v41 }
 0x229   : > { %v1587_v30 = vpop.permute.xlu1 %1586 }
 0x22a   : > { %1815 = vst [vmem:[%s3440_s17 + $0x178] sm:$0xff] %v1751_v58  ;;  %v1744_v16 = vmul.f32 %v2320_v63, %v1587_v30 }
 0x22b   : > { %v1632_v50 = vpop.permute.xlu0 %1631 }
 0x22c   : > { %1808 = vst [vmem:[%s3440_s17 + $0x140] sm:$0xff] %v1744_v16  ;;  %v1753_v1 = vmul.f32 %v2321_v2, %v1632_v50 }
 0x22d   : > { %v1597_v6 = vpop.permute.xlu1 %1596 }
 0x22e   : > { %1817 = vst [vmem:[%s3440_s17 + $0x188] sm:$0xff] %v1753_v1  ;;  %v1746_v4 = vmul.f32 %v2322_v19, %v1597_v6 }
 0x22f   : > { %v1642_v46 = vpop.permute.xlu0 %1641 }
 0x230   : > { %1810 = vst [vmem:[%s3440_s17 + $0x150] sm:$0xff] %v1746_v4  ;;  %v1755_v56 = vmul.f32 %v2323_v12, %v1642_v46 }
 0x231   : > { %v1607_v37 = vpop.permute.xlu1 %1606 }
 0x232   : > { %1819 = vst [vmem:[%s3440_s17 + $0x198] sm:$0xff] %v1755_v56  ;;  %v1748_v38 = vmul.f32 %v2324_v45, %v1607_v37 }
 0x233   : > { %v1652_v26 = vpop.permute.xlu0 %1651 }
 0x234   : > { %1812 = vst [vmem:[%s3440_s17 + $0x160] sm:$0xff] %v1748_v38  ;;  %v1757_v9 = vmul.f32 %v2325_v34, %v1652_v26 }
 0x235   : > { %v1617_v35 = vpop.permute.xlu1 %1616 }
 0x236   : > { %1821 = vst [vmem:[%s3440_s17 + $0x1a8] sm:$0xff] %v1757_v9  ;;  %v1750_v13 = vmul.f32 %v2326_v5, %v1617_v35 }
 0x237   : > { %v1662_v0 = vpop.permute.xlu0 %1661 }
 0x238   : > { %1814 = vst [vmem:[%s3440_s17 + $0x170] sm:$0xff] %v1750_v13  ;;  %v1759_v7 = vmul.f32 %v2327_v28, %v1662_v0 }
 0x239   : > { %v1627_v29 = vpop.permute.xlu1 %1626 }
 0x23a   : > { %1823 = vst [vmem:[%s3440_s17 + $0x1b8] sm:$0xff] %v1759_v7  ;;  %v1752_v18 = vmul.f32 %v2328_v36, %v1627_v29 }
 0x23b   : > { %v1672_v49 = vpop.permute.xlu0 %1671 }
 0x23c   : > { %1816 = vst [vmem:[%s3440_s17 + $0x180] sm:$0xff] %v1752_v18  ;;  %v1761_v8 = vmul.f32 %v2329_v31, %v1672_v49 }
 0x23d   : > { %v1637_v17 = vpop.permute.xlu1 %1636 }
 0x23e   : > { %1825 = vst [vmem:[%s3440_s17 + $0x1c8] sm:$0xff] %v1761_v8  ;;  %v1754_v54 = vmul.f32 %v2330_v22, %v1637_v17 }
 0x23f   : > { %v1682_v61 = vpop.permute.xlu0 %1681 }
 0x240   : > { %1818 = vst [vmem:[%s3440_s17 + $0x190] sm:$0xff] %v1754_v54  ;;  %v1763_v10 = vmul.f32 %v2331_v25, %v1682_v61 }
 0x241   : > { %v1647_v15 = vpop.permute.xlu1 %1646 }
 0x242   : > { %1827 = vst [vmem:[%s3440_s17 + $0x1d8] sm:$0xff] %v1763_v10  ;;  %v1756_v24 = vmul.f32 %v2332_v44, %v1647_v15 }
 0x243   : > { %v1692_v60 = vpop.permute.xlu0 %1691 }
 0x244   : > { %1820 = vst [vmem:[%s3440_s17 + $0x1a0] sm:$0xff] %v1756_v24  ;;  %v1765_v57 = vmul.f32 %v2333_v14, %v1692_v60 }
 0x245   : > { %v1657_v52 = vpop.permute.xlu1 %1656 }
 0x246   : > { %1829 = vst [vmem:[%s3440_s17 + $0x1e8] sm:$0xff] %v1765_v57  ;;  %v1758_v11 = vmul.f32 %v2334_v47, %v1657_v52 }
 0x247   : > { %v1702_v43 = vpop.permute.xlu0 %1701 }
 0x248   : > { %1822 = vst [vmem:[%s3440_s17 + $0x1b0] sm:$0xff] %v1758_v11  ;;  %v1767_v33 = vmul.f32 %v2335_v32, %v1702_v43 }
 0x249   : > { %v1667_v59 = vpop.permute.xlu1 %1666 }
 0x24a   : > { %1831 = vst [vmem:[%s3440_s17 + $0x1f8] sm:$0xff] %v1767_v33  ;;  %v1760_v62 = vmul.f32 %v2336_v39, %v1667_v59 }
 0x24c   : > { %1824 = vst [vmem:[%s3440_s17 + $0x1c0] sm:$0xff] %v1760_v62 }
 0x24d   : > { %v1677_v51 = vpop.permute.xlu1 %1676 }
 0x24e   : > { %v1762_v42 = vmul.f32 %v2337_v3, %v1677_v51 }
 0x250   : > { %1826 = vst [vmem:[%s3440_s17 + $0x1d0] sm:$0xff] %v1762_v42 }
 0x251   : > { %v1687_v20 = vpop.permute.xlu1 %1686 }
 0x252   : > { %v1764_v23 = vmul.f32 %v2338_v40, %v1687_v20 }
 0x254   : > { %1828 = vst [vmem:[%s3440_s17 + $0x1e0] sm:$0xff] %v1764_v23 }
 0x255   : > { %v1697_v53 = vpop.permute.xlu1 %1696 }
 0x256   : > { %v1766_v27 = vmul.f32 %v2339_v55, %v1697_v53 }
 0x258   : > { %1830 = vst [vmem:[%s3440_s17 + $0x1f0] sm:$0xff] %v1766_v27 }
 0x259   : > { %2383 = shalt.err (!%p2380_p2)
}
 0x25a   : > { %s2384_s8 = scalar_lea.hbm %s3590_s30, 8192  ;;  %s2388_s13 = scalar_lea.hbm %s3644_s6, 16384 }
 0x25b   : > { %p2385_p4 = scmp.ne.s32.totalorder %s3590_s30, %s2384_s8  ;;  %p2389_p9 = scmp.lt.u32.totalorder %s3590_s30, %s3644_s6 }
 0x25c   : > { %p2390_p1 = scmp.lt.u32.totalorder %s2388_s13, %s2384_s8  ;;  %p2392_p6 = scmp.lt.u32.totalorder %s2384_s8, %s3590_s30 }
 0x25d   : > { %p2386_p5 = pnand %p2385_p4, %p3663_p11 }
 0x25e   : > { %p2391_p3 = por %p2390_p1, %p2389_p9 }
 0x25f   : > { %p2387_p7 = pneg %p2386_p5 }
 0x260   : > { %p2393_p12 = por %p2392_p6, %p2391_p3 }
 0x262   : > { %p2394_p13 = pnand %p2393_p12, %p2387_p7 }
 0x264   : > { %2397 = shalt.err (!%p2394_p13)
}
 0x265   : > { %s2443_s15 = smov 128   ;;  %s2444_s18 = smov 8  }
 0x266   : > { %1943 = dma.vmem_to_hbm [thread:$0]  (%p3663_p11), %s3592_s16, 8192, %s3590_s30, %s1833_s19, %s2443_s15, %s2443_s15, %s2444_s18  }
 0x267 PF: > { %s1862_s22 = sand.u32 1, %s2424_s23   ;;  %p3664_p8 = scmp.ne.s32.totalorder %s3655_s11, 0 }
 0x268   : > { %p3665_p10 = scmp.ge.s32.totalorder %s2436_s26, 2  ;;  %s1863_s9 = scalar_lea.sflag [#allocation5], %s1862_s22 }
 0x26a   : > { %p1950_p0 = pnand %p3665_p10, %p3664_p8 }
 0x26c   : > { %2419 = dma.done.wait (!%p1950_p0), %s1863_s9, 8192  }
 0x26d   : > { %2421 = vsyncadd (!%p1950_p0), %s1863_s9, 4294959104  ;;  %p20_p2 = scmp.ge.s32.totalorder %s2508_s28, 4   ;;  %s3666_s23 = smov %s2428_s24 }
 0x26e   : > { %s3667_s24 = smov %s2432_s25  ;;  %s3668_s25 = smov %s2520_s7 }
 0x26f   : > { %s3669_s26 = smov %s2508_s28  ;;  %22 = sbr.rel (!%p20_p2) target bundleno = 7 (0x7), region = 89 }
 0x276   :  { %1868 = vsyncpa [#allocation4], 1 }
 0x277   :  { %1870 = vsyncpa [#allocation4 + $0x1], 1 }
 0x278   :  { %1871 = vsyncpa [#allocation5], 1 }
 0x279   :  { %1873 = vsyncpa [#allocation5 + $0x1], 1 }

</bundles_post_ra>
